<compile_context>
chip_gen: v5e
topology: v5e:2x2
jax: 0.10.0
libtpu: 0.0.40
codegen_flags: <defaults>
</compile_context>

<pallas_src>
import jax
import jax.numpy as jnp
from jax.experimental import pallas as pl
from jax.experimental.pallas import tpu as pltpu


def _round_up(x, m):
    return (x + m - 1) // m * m


# ---------------------------------------------------------------------------
# Fused kernel: one-hot gather + conv (single matmul) + bias + ReLU + masked
# max-pool over time + abs-diff + final Linear, per batch tile.
# ---------------------------------------------------------------------------
def _siamese_kernel(win_ref, wg_ref, b_ref, mask_ref, fcw_ref, fcb_ref, out_ref):
    _, TB, t_pad, n_tap = win_ref.shape          # (2, TB, t_pad, 4) int32 ids
    V_pad = wg_ref.shape[0] // n_tap
    NC = wg_ref.shape[1]
    M = 2 * TB * t_pad

    # Windowed token ids -> one-hot im2col rows.  Each tap's one-hot block is
    # exactly 128 lanes, so the concat below is vreg-column placement (no lane
    # shuffles) and the kernel never touches gathered embedding data at all.
    win = win_ref[...].reshape(M, n_tap)
    v_iota = jax.lax.broadcasted_iota(jnp.int32, (M, V_pad), 1)
    oh = jnp.concatenate(
        [(win[:, j:j + 1] == v_iota).astype(jnp.bfloat16) for j in range(n_tap)],
        axis=1)                                              # (M, 4*V_pad) bf16

    # Single K = 4*V_pad matmul: embedding gather AND all three convs for both
    # Siamese branches (conv weights pre-contracted with the embedding table in
    # the wrapper).  f32 accumulation on the MXU.
    z = jnp.dot(oh, wg_ref[...], preferred_element_type=jnp.float32)   # (M, NC)
    z = jnp.maximum(z + b_ref[...], 0.0)                     # bias + ReLU
    # Precomputed validity mask (conv kh=2/3/4 only have S-1/S-2/S-3 positions,
    # padded t rows / channels are zeroed; ReLU output >= 0 so zeros never win).
    z = z.reshape(2 * TB, t_pad, NC) * mask_ref[...]

    pooled = jnp.max(z, axis=1)                              # (2*TB, NC)
    diff = jnp.abs(pooled[:TB] - pooled[TB:])                # (TB, NC)

    out = jnp.dot(diff.astype(fcw_ref.dtype), fcw_ref[...],
                  preferred_element_type=jnp.float32) + fcb_ref[...]
    out_ref[...] = out.astype(out_ref.dtype)                 # lane-dense (TB, 128)


# ---------------------------------------------------------------------------
# Wrapper: id windowing + weight fusion/padding in JAX, everything else in Pallas.
# ---------------------------------------------------------------------------
def siamese_cnn_forward(x1_ids, x2_ids, params, *, batch_tile=None):
    emb = params["embedding"]                    # (V, D) f32
    V, D = emb.shape
    B, S = x1_ids.shape
    assert S >= 4, "need seq_len >= max conv kernel height (4)"
    OUT = params["fc_b"].shape[-1]
    KH = (2, 3, 4)
    n_tap = max(KH)                              # 4 im2col taps

    # Static geometry: conv-window count padded to a bf16 sublane-pack multiple
    # (16) so in-kernel (rows, t, lanes) <-> (rows*t, lanes) reshapes stay on
    # tile boundaries; vocab / channels / output padded to dense 128 lanes.
    t_pad = _round_up(S - 1, 16)
    s_pad = t_pad + n_tap - 1
    V_pad = max(128, _round_up(V, 128))
    NC = max(128, _round_up(3 * D, 128))
    NOUT = max(128, _round_up(OUT, 128))

    # Batch tiling: large tiles amortize the ~0.35us/step pipeline overhead, but
    # bound the per-step one-hot (2*TB*t_pad, 4*V_pad) to a few MiB of VMEM
    # (v7x only has 64 MiB), and keep >= 2 grid steps when B allows so
    # dimension_semantics=("parallel",) can shard across both v7x TensorCores.
    B8 = _round_up(B, 8)
    if batch_tile is None:
        row_cap = max(8, (4096 // (2 * t_pad)) // 8 * 8)
        batch_tile = max(8, min(128, B8, row_cap))
        if B8 >= 16 and B8 <= batch_tile:
            batch_tile = _round_up((B8 + 1) // 2, 8)
    B_pad = _round_up(B8, batch_tile)

    # Integer id plumbing (tiny HBM traffic; replaces the (B, S, D) activation
    # round trip of a wrapper-side embedding gather).
    ids = jnp.stack([x1_ids, x2_ids], axis=0).astype(jnp.int32)       # (2, B, S)
    ids = jnp.pad(ids, ((0, 0), (0, B_pad - B), (0, s_pad - S)))      # pad with id 0
    # win[c, b, t, j] = ids[c, b, t + j] -- the kernel one-hots these directly.
    win = jnp.stack([ids[:, :, j:j + t_pad] for j in range(n_tap)], axis=-1)

    # Fused (embedding-gather o conv) weight:
    #   W_g[j*V_pad + v, i*D + c] = sum_d emb[v, d] * w_kh[j, d, c]   (kh = 2+i)
    # so one-hot(win) @ W_g == gather + conv exactly.  Taps j >= kh and pad
    # rows/cols stay zero.  Built in f32, rounded to bf16 once.
    # TODO(synk): for large vocabularies the one-hot gather matmul (K = 4*V_pad)
    # should be replaced by a DMA / wrapper-side gather producing lane-dense
    # im2col rows; it is only the right fusion for small embedding tables.
    emb_f32 = emb.astype(jnp.float32)
    w_g = jnp.zeros((n_tap * V_pad, NC), jnp.float32)
    b_f = jnp.zeros((1, NC), jnp.float32)
    for i, kh in enumerate(KH):
        w_kh = params[f"w{kh}"].astype(jnp.float32)          # (kh, D, D)
        for j in range(kh):
            w_g = w_g.at[j * V_pad:j * V_pad + V, i * D:(i + 1) * D].set(emb_f32 @ w_kh[j])
        b_f = b_f.at[:, i * D:(i + 1) * D].set(params[f"b{kh}"])
    w_g = w_g.astype(jnp.bfloat16)

    fc_w = (jnp.zeros((NC, NOUT), jnp.float32)
            .at[:3 * D, :OUT].set(params["fc_w"]).astype(jnp.bfloat16))
    fc_b = jnp.zeros((1, NOUT), jnp.float32).at[:, :OUT].set(params["fc_b"])

    # Precomputed time-validity mask (VMEM-resident, fetched once).
    c_idx = jnp.arange(NC)[None, :]
    n_valid = jnp.where(c_idx < D, S - 1,
              jnp.where(c_idx < 2 * D, S - 2,
              jnp.where(c_idx < 3 * D, S - 3, 0)))
    mask = (jnp.arange(t_pad)[:, None] < n_valid).astype(jnp.float32)[None]  # (1, t_pad, NC)

    # VMEM budget (explicit headroom; stays well under v7x's 64 MiB).
    M = 2 * batch_tile * t_pad
    vmem_est = (2 * 2 * batch_tile * t_pad * 128 * 4       # double-buffered id tiles (lane-padded)
                + 2 * batch_tile * NOUT * 4                # double-buffered output tile
                + 2 * (w_g.size + fc_w.size) * 2           # resident bf16 weights
                + 2 * (b_f.size + fc_b.size + mask.size) * 4
                + M * n_tap * V_pad * 2                    # one-hot intermediate
                + 2 * M * NC * 4)                          # conv accumulator + epilogue temps
    vmem_limit = int(min(max(2 * vmem_est, 32 << 20), 48 << 20))

    out = pl.pallas_call(
        _siamese_kernel,
        out_shape=jax.ShapeDtypeStruct((B_pad, NOUT), jnp.float32),
        grid=(B_pad // batch_tile,),
        in_specs=[
            pl.BlockSpec((2, batch_tile, t_pad, n_tap), lambda b: (0, b, 0, 0)),
            pl.BlockSpec(w_g.shape, lambda b: (0, 0)),       # VMEM-resident weights
            pl.BlockSpec(b_f.shape, lambda b: (0, 0)),
            pl.BlockSpec(mask.shape, lambda b: (0, 0, 0)),
            pl.BlockSpec(fc_w.shape, lambda b: (0, 0)),
            pl.BlockSpec(fc_b.shape, lambda b: (0, 0)),
        ],
        out_specs=pl.BlockSpec((batch_tile, NOUT), lambda b: (b, 0)),
        compiler_params=pltpu.CompilerParams(
            dimension_semantics=("parallel",),
            vmem_limit_bytes=vmem_limit),
    )(win, w_g, b_f, mask, fc_w, fc_b)
    return out[:B, :OUT]


# ---------------------------------------------------------------------------
# Deterministic parameter construction (mirrors the nn.Module __init__ shapes).
# ---------------------------------------------------------------------------
def make_params(key, num_embeddings, embedding_dim, out_features):
    D = embedding_dim
    ks = jax.random.split(key, 10)

    def uniform(k, shape, scale):
        return jax.random.uniform(k, shape, jnp.float32, -scale, scale)

    params = {
        # nn.Embedding(num_embeddings, D)
        "embedding": jax.random.normal(ks[0], (num_embeddings, D), jnp.float32),
    }
    # Conv2d(1, D, kernel_size=(kh, D)): torch weight (D, 1, kh, D).
    # Stored here as (kh, D_in, D_out), i.e. w[j, d, c] = W_torch[c, 0, j, d].
    for i, kh in enumerate((2, 3, 4)):
        fan_in = 1 * kh * D
        scale = 1.0 / jnp.sqrt(fan_in)
        params[f"w{kh}"] = uniform(ks[1 + 2 * i], (kh, D, D), scale)
        params[f"b{kh}"] = uniform(ks[2 + 2 * i], (1, D), scale)
    # nn.Linear(3*D, out_features): stored as (3D, out) so out = x @ W + b.
    scale = 1.0 / jnp.sqrt(3 * D)
    params["fc_w"] = uniform(ks[7], (3 * D, out_features), scale)
    params["fc_b"] = uniform(ks[8], (1, out_features), scale)
    return params


# ---------------------------------------------------------------------------
# Pure-JAX f32 reference (matches the PyTorch forward) for correctness check.
# ---------------------------------------------------------------------------
def reference_forward(x1_ids, x2_ids, params):
    emb = params["embedding"]

    def branch(ids):
        x = jnp.take(emb, ids, axis=0)  # (B, S, D)
        pools = []
        for kh in (2, 3, 4):
            w, b = params[f"w{kh}"], params[f"b{kh}"][0]
            T = x.shape[1] - kh + 1
            acc = sum(jnp.einsum("btd,dc->btc", x[:, j:j + T, :], w[j])
                      for j in range(kh)) + b[None, None, :]
            pools.append(jnp.max(jax.nn.relu(acc), axis=1))
        return jnp.concatenate(pools, axis=-1)

    diff = jnp.abs(branch(x1_ids) - branch(x2_ids))
    return diff @ params["fc_w"] + params["fc_b"][0]


if __name__ == "__main__":
    B, S = 2, 8                  # batch, sequence length
    V, D = 100, 32               # num_embeddings, embedding_dim
    OUT = 16                     # out_features; kernel_size = [2, 3, 4]

    key = jax.random.PRNGKey(0)
    kp, k1, k2 = jax.random.split(key, 3)
    params = make_params(kp, V, D, OUT)
    x1_ids = jax.random.randint(k1, (B, S), 0, V)
    x2_ids = jax.random.randint(k2, (B, S), 0, V)

    fwd = jax.jit(siamese_cnn_forward)
    out = jax.block_until_ready(fwd(x1_ids, x2_ids, params))
    ref = jax.block_until_ready(reference_forward(x1_ids, x2_ids, params))

    assert out.shape == (B, OUT), out.shape
    err = jnp.max(jnp.abs(out - ref))
    # bf16 fused weights (exact one-hot, f32 MXU accumulation) vs f32 reference.
    assert jnp.allclose(out, ref, atol=3e-2, rtol=3e-2), f"max abs err {err}"
    # TODO(synk): nn.Dropout(0.3) is defined but never applied in forward(), so it is omitted.
    print("KERNEL_OK")
</pallas_src>

<mosaic_0001>
module attributes {stable_mosaic.version = 11 : i64} {
  func.func @_siamese_kernel(%arg0: i32, %arg1: memref<2x8x16x4xi32, #tpu.memory_space<vmem>>, %arg2: memref<512x128xbf16, #tpu.memory_space<vmem>>, %arg3: memref<1x128xf32, #tpu.memory_space<vmem>>, %arg4: memref<1x16x128xf32, #tpu.memory_space<vmem>>, %arg5: memref<128x128xbf16, #tpu.memory_space<vmem>>, %arg6: memref<1x128xf32, #tpu.memory_space<vmem>>, %arg7: memref<8x128xf32, #tpu.memory_space<vmem>>) attributes {dimension_semantics = [#tpu.dimension_semantics<parallel>], iteration_bounds = array<i64: 1>, scalar_prefetch = 0 : i64, scratch_operands = 0 : i64, tpu.core_type = #tpu.core_type<tc>, window_params = [{transform_indices = @transform_0, window_bounds = array<i64: 2, 8, 16, 4>}, {pipeline_mode = #tpu.pipeline_mode<synchronous>, transform_indices = @transform_1, window_bounds = array<i64: 512, 128>}, {pipeline_mode = #tpu.pipeline_mode<synchronous>, transform_indices = @transform_2, window_bounds = array<i64: 1, 128>}, {pipeline_mode = #tpu.pipeline_mode<synchronous>, transform_indices = @transform_3, window_bounds = array<i64: 1, 16, 128>}, {pipeline_mode = #tpu.pipeline_mode<synchronous>, transform_indices = @transform_4, window_bounds = array<i64: 128, 128>}, {pipeline_mode = #tpu.pipeline_mode<synchronous>, transform_indices = @transform_5, window_bounds = array<i64: 1, 128>}, {transform_indices = @transform_6, window_bounds = array<i64: 8, 128>}]} {
    %c0 = arith.constant 0 : index
    %c0_0 = arith.constant 0 : index
    %c0_1 = arith.constant 0 : index
    %c0_2 = arith.constant 0 : index
    %0 = vector.load %arg1[%c0, %c0_0, %c0_1, %c0_2] : memref<2x8x16x4xi32, #tpu.memory_space<vmem>>, vector<2x8x16x4xi32>
    %1 = vector.shape_cast %0 : vector<2x8x16x4xi32> to vector<256x4xi32>
    %2 = tpu.iota {dimensions = array<i32: 1>} : vector<256x128xi32>
    %3 = vector.extract_strided_slice %1 {offsets = [0, 0], sizes = [256, 1], strides = [1, 1]} : vector<256x4xi32> to vector<256x1xi32>
    %4 = vector.broadcast %3 : vector<256x1xi32> to vector<256x128xi32>
    %5 = arith.cmpi eq, %4, %2 : vector<256x128xi32>
    %6 = arith.extui %5 : vector<256x128xi1> to vector<256x128xi32>
    %7 = arith.sitofp %6 : vector<256x128xi32> to vector<256x128xf32>
    %8 = arith.truncf %7 : vector<256x128xf32> to vector<256x128xbf16>
    %9 = vector.extract_strided_slice %1 {offsets = [0, 1], sizes = [256, 1], strides = [1, 1]} : vector<256x4xi32> to vector<256x1xi32>
    %10 = vector.broadcast %9 : vector<256x1xi32> to vector<256x128xi32>
    %11 = arith.cmpi eq, %10, %2 : vector<256x128xi32>
    %12 = arith.extui %11 : vector<256x128xi1> to vector<256x128xi32>
    %13 = arith.sitofp %12 : vector<256x128xi32> to vector<256x128xf32>
    %14 = arith.truncf %13 : vector<256x128xf32> to vector<256x128xbf16>
    %15 = vector.extract_strided_slice %1 {offsets = [0, 2], sizes = [256, 1], strides = [1, 1]} : vector<256x4xi32> to vector<256x1xi32>
    %16 = vector.broadcast %15 : vector<256x1xi32> to vector<256x128xi32>
    %17 = arith.cmpi eq, %16, %2 : vector<256x128xi32>
    %18 = arith.extui %17 : vector<256x128xi1> to vector<256x128xi32>
    %19 = arith.sitofp %18 : vector<256x128xi32> to vector<256x128xf32>
    %20 = arith.truncf %19 : vector<256x128xf32> to vector<256x128xbf16>
    %21 = vector.extract_strided_slice %1 {offsets = [0, 3], sizes = [256, 1], strides = [1, 1]} : vector<256x4xi32> to vector<256x1xi32>
    %22 = vector.broadcast %21 : vector<256x1xi32> to vector<256x128xi32>
    %23 = arith.cmpi eq, %22, %2 : vector<256x128xi32>
    %24 = arith.extui %23 : vector<256x128xi1> to vector<256x128xi32>
    %25 = arith.sitofp %24 : vector<256x128xi32> to vector<256x128xf32>
    %26 = arith.truncf %25 : vector<256x128xf32> to vector<256x128xbf16>
    %27 = tpu.concatenate %8, %14, %20, %26 in 1 : vector<256x128xbf16>, vector<256x128xbf16>, vector<256x128xbf16>, vector<256x128xbf16> -> vector<256x512xbf16>
    %c0_3 = arith.constant 0 : index
    %c0_4 = arith.constant 0 : index
    %28 = vector.load %arg2[%c0_3, %c0_4] : memref<512x128xbf16, #tpu.memory_space<vmem>>, vector<512x128xbf16>
    %cst = arith.constant dense<0.000000e+00> : vector<256x128xf32>
    %29 = tpu.matmul %27, %28, %cst {dimension_numbers = #tpu.dot_dimension_numbers<[1], [0], [0], [1], [0, 0, 1, 1], [], []>} : vector<256x512xbf16>, vector<512x128xbf16>, vector<256x128xf32> -> vector<256x128xf32>
    %c0_5 = arith.constant 0 : index
    %c0_6 = arith.constant 0 : index
    %30 = vector.load %arg3[%c0_5, %c0_6] : memref<1x128xf32, #tpu.memory_space<vmem>>, vector<1x128xf32>
    %31 = vector.broadcast %30 : vector<1x128xf32> to vector<256x128xf32>
    %32 = arith.addf %29, %31 : vector<256x128xf32>
    %cst_7 = arith.constant 0.000000e+00 : f32
    %33 = vector.broadcast %cst_7 : f32 to vector<256x128xf32>
    %34 = arith.maximumf %32, %33 : vector<256x128xf32>
    %35 = vector.shape_cast %34 : vector<256x128xf32> to vector<16x16x128xf32>
    %c0_8 = arith.constant 0 : index
    %c0_9 = arith.constant 0 : index
    %c0_10 = arith.constant 0 : index
    %36 = vector.load %arg4[%c0_8, %c0_9, %c0_10] : memref<1x16x128xf32, #tpu.memory_space<vmem>>, vector<1x16x128xf32>
    %37 = vector.broadcast %36 : vector<1x16x128xf32> to vector<16x16x128xf32>
    %38 = arith.mulf %35, %37 : vector<16x16x128xf32>
    %cst_11 = arith.constant dense<0xFF800000> : vector<16x128xf32>
    %39 = vector.multi_reduction <maximumf>, %38, %cst_11 [1] : vector<16x16x128xf32> to vector<16x128xf32>
    %40 = vector.extract_strided_slice %39 {offsets = [0, 0], sizes = [8, 128], strides = [1, 1]} : vector<16x128xf32> to vector<8x128xf32>
    %41 = vector.extract_strided_slice %39 {offsets = [8, 0], sizes = [8, 128], strides = [1, 1]} : vector<16x128xf32> to vector<8x128xf32>
    %42 = arith.subf %40, %41 : vector<8x128xf32>
    %43 = math.absf %42 : vector<8x128xf32>
    %44 = arith.truncf %43 : vector<8x128xf32> to vector<8x128xbf16>
    %c0_12 = arith.constant 0 : index
    %c0_13 = arith.constant 0 : index
    %45 = vector.load %arg5[%c0_12, %c0_13] : memref<128x128xbf16, #tpu.memory_space<vmem>>, vector<128x128xbf16>
    %cst_14 = arith.constant dense<0.000000e+00> : vector<8x128xf32>
    %46 = tpu.matmul %44, %45, %cst_14 {dimension_numbers = #tpu.dot_dimension_numbers<[1], [0], [0], [1], [0, 0, 1, 1], [], []>} : vector<8x128xbf16>, vector<128x128xbf16>, vector<8x128xf32> -> vector<8x128xf32>
    %c0_15 = arith.constant 0 : index
    %c0_16 = arith.constant 0 : index
    %47 = vector.load %arg6[%c0_15, %c0_16] : memref<1x128xf32, #tpu.memory_space<vmem>>, vector<1x128xf32>
    %48 = vector.broadcast %47 : vector<1x128xf32> to vector<8x128xf32>
    %49 = arith.addf %46, %48 : vector<8x128xf32>
    %c0_17 = arith.constant 0 : index
    %c0_18 = arith.constant 0 : index
    %50 = vector.load %arg7[%c0_17, %c0_18] : memref<8x128xf32, #tpu.memory_space<vmem>>, vector<8x128xf32>
    tpu.vector_store %arg7[%c0_17, %c0_18], %49 {strides = array<i32>} : memref<8x128xf32, #tpu.memory_space<vmem>>, vector<8x128xf32>,
    return
  }
  func.func @transform_0(%arg0: i32) -> (i32, i32, i32, i32) {
    %c0_i32 = arith.constant 0 : i32
    %c0_i32_0 = arith.constant 0 : i32
    %c0_i32_1 = arith.constant 0 : i32
    %c0_i32_2 = arith.constant 0 : i32
    return %c0_i32, %arg0, %c0_i32_0, %c0_i32_1 : i32, i32, i32, i32
  }
  func.func @transform_1(%arg0: i32) -> (i32, i32) {
    %c0_i32 = arith.constant 0 : i32
    %c0_i32_0 = arith.constant 0 : i32
    %c0_i32_1 = arith.constant 0 : i32
    return %c0_i32, %c0_i32_0 : i32, i32
  }
  func.func @transform_2(%arg0: i32) -> (i32, i32) {
    %c0_i32 = arith.constant 0 : i32
    %c0_i32_0 = arith.constant 0 : i32
    %c0_i32_1 = arith.constant 0 : i32
    return %c0_i32, %c0_i32_0 : i32, i32
  }
  func.func @transform_3(%arg0: i32) -> (i32, i32, i32) {
    %c0_i32 = arith.constant 0 : i32
    %c0_i32_0 = arith.constant 0 : i32
    %c0_i32_1 = arith.constant 0 : i32
    %c0_i32_2 = arith.constant 0 : i32
    return %c0_i32, %c0_i32_0, %c0_i32_1 : i32, i32, i32
  }
  func.func @transform_4(%arg0: i32) -> (i32, i32) {
    %c0_i32 = arith.constant 0 : i32
    %c0_i32_0 = arith.constant 0 : i32
    %c0_i32_1 = arith.constant 0 : i32
    return %c0_i32, %c0_i32_0 : i32, i32
  }
  func.func @transform_5(%arg0: i32) -> (i32, i32) {
    %c0_i32 = arith.constant 0 : i32
    %c0_i32_0 = arith.constant 0 : i32
    %c0_i32_1 = arith.constant 0 : i32
    return %c0_i32, %c0_i32_0 : i32, i32
  }
  func.func @transform_6(%arg0: i32) -> (i32, i32) {
    %c0_i32 = arith.constant 0 : i32
    %c0_i32_0 = arith.constant 0 : i32
    return %arg0, %c0_i32 : i32, i32
  }
}

</mosaic_0001>

<bundles_post_ra>
// kernel: siamese_cnn_forward.1
= control target key start
LH: loop header
LB: loop body
LE: loop exit
PB: predicated region body
PF: predicated region fallthrough
CT: control target
= control target key end

     0   :  { %v2713_v0 = vmov 0   ;;  %v2714_v35 = vmov 3   ;;  %v2715_v36 = vmov 2   ;;  %v2716_v37 = vmov 1   ;;  %s3822_s0 = inlined_call_operand.vmem [shape: s32[2,8,16,4], index: 0, kind: input, shape index: {}]   ;;  %s3823_s1 = inlined_call_operand.vmem [shape: bf16[512,128], index: 1, kind: input, shape index: {}]   ;;  %s3824_s2 = inlined_call_operand.vmem [shape: f32[1,128], index: 2, kind: input, shape index: {}]   ;;  %s3825_s3 = inlined_call_operand.vmem [shape: f32[1,16,128], index: 3, kind: input, shape index: {}]   ;;  %s3826_s4 = inlined_call_operand.vmem [shape: bf16[128,128], index: 4, kind: input, shape index: {}]   ;;  %s3827_s5 = inlined_call_operand.vmem [shape: f32[1,128], index: 5, kind: input, shape index: {}]   ;;  %s3828_s6 = inlined_call_operand.vmem [shape: f32[8,128], index: 6, kind: output, shape index: {}]  }
   0x1   :  { %2608 = vset.pattern.permute.xlu2 %v2713_v0  ;;  %2607 = vset.pattern.permute.xlu1 %v2713_v0  ;;  %v2758_v1 = vld [vmem:[%s3822_s0 + $0x20] sm:$0xff]  ;;  %v2763_v2 = vld [vmem:[%s3822_s0 + $0x10] sm:$0xff]  ;;  %v2777_v4 = vld [vmem:[%s3822_s0 + $0x28] sm:$0xff]  ;;  %v55_v45 = vlaneseq  ;;  %v2717_v50 = vmov 0.0  }
   0x2   :  { %v2768_v3 = vld [vmem:[%s3822_s0] sm:$0xff]  ;;  %2606 = vset.pattern.permute.xlu0 %v2713_v0  ;;  %70 = vperm.xlu2 %2608, %v2758_v1   ;;  %v2782_v5 = vld [vmem:[%s3822_s0 + $0x18] sm:$0xff]  ;;  %v2787_v6 = vld [vmem:[%s3822_s0 + $0x8] sm:$0xff] }
   0x3   :  { %64 = vperm.xlu1 %2607, %v2763_v2   ;;  %58 = vperm.xlu0 %2606, %v2768_v3   ;;  %v2795_v7 = vld [vmem:[%s3822_s0 + $0x40] sm:$0xff]  ;;  %v2800_v8 = vld [vmem:[%s3822_s0 + $0x38] sm:$0xff]  ;;  %v2805_v9 = vld [vmem:[%s3822_s0 + $0x30] sm:$0xff]  ;;  %v2976_v46 = vand.u32 127, %v55_v45 }
   0x4   :  { %v2813_v10 = vld [vmem:[%s3822_s0 + $0x58] sm:$0xff]  ;;  %v2818_v11 = vld [vmem:[%s3822_s0 + $0x50] sm:$0xff]  ;;  %v2823_v12 = vld [vmem:[%s3822_s0 + $0x48] sm:$0xff] }
   0x5   :  { %v2831_v13 = vld [vmem:[%s3822_s0 + $0x70] sm:$0xff]  ;;  %v2836_v14 = vld [vmem:[%s3822_s0 + $0x68] sm:$0xff]  ;;  %v2841_v15 = vld [vmem:[%s3822_s0 + $0x60] sm:$0xff] }
   0x6   :  { %v2849_v16 = vld [vmem:[%s3822_s0 + $0x88] sm:$0xff]  ;;  %v2854_v17 = vld [vmem:[%s3822_s0 + $0x80] sm:$0xff]  ;;  %v2859_v18 = vld [vmem:[%s3822_s0 + $0x78] sm:$0xff] }
   0x7   :  { %v43_v19 = vld [vmem:[%s3822_s0 + $0xa0] sm:$0xff]  ;;  %v42_v20 = vld [vmem:[%s3822_s0 + $0x98] sm:$0xff]  ;;  %v2873_v21 = vld [vmem:[%s3822_s0 + $0x90] sm:$0xff] }
   0x8   :  { %v2879_v22 = vld [vmem:[%s3822_s0 + $0xb8] sm:$0xff]  ;;  %v2884_v23 = vld [vmem:[%s3822_s0 + $0xb0] sm:$0xff]  ;;  %v2889_v24 = vld [vmem:[%s3822_s0 + $0xa8] sm:$0xff] }
   0x9   :  { %v2897_v25 = vld [vmem:[%s3822_s0 + $0xd0] sm:$0xff]  ;;  %v2902_v26 = vld [vmem:[%s3822_s0 + $0xc8] sm:$0xff]  ;;  %v2907_v27 = vld [vmem:[%s3822_s0 + $0xc0] sm:$0xff] }
   0xa   :  { %73 = vperm.xlu2 %2608, %v2777_v4   ;;  %v2568_v28 = vld [vmem:[%s3823_s1 + $0x38] sm:$0xff]  ;;  %v2918_v29 = vld [vmem:[%s3822_s0 + $0xe8] sm:$0xff]  ;;  %v51_v30 = vld [vmem:[%s3822_s0 + $0xe0] sm:$0xff] }
   0xb   :  { %67 = vperm.xlu1 %2607, %v2782_v5   ;;  %61 = vperm.xlu0 %2606, %v2787_v6   ;;  %v50_v31 = vld [vmem:[%s3822_s0 + $0xd8] sm:$0xff]  ;;  %v2567_v32 = vld [vmem:[%s3823_s1 + $0x30] sm:$0xff]  ;;  %v2566_v33 = vld [vmem:[%s3823_s1 + $0x28] sm:$0xff] }
   0xc   :  { %1597 = vmatpush.bf16.msra.mxu0 %v2568_v28  ;;  %v2565_v34 = vld [vmem:[%s3823_s1 + $0x20] sm:$0xff]  ;;  %v2564_v38 = vld [vmem:[%s3823_s1 + $0x18] sm:$0xff]  ;;  %v2563_v39 = vld [vmem:[%s3823_s1 + $0x10] sm:$0xff] }
   0xd   :  { %v2562_v41 = vld [vmem:[%s3823_s1 + $0x8] sm:$0xff]  ;;  %v2561_v42 = vld [vmem:[%s3823_s1] sm:$0xff] }
  0x10   :  { %1598 = vmatpush.bf16.msra.mxu0 %v2567_v32 }
  0x12   :  { %82 = vperm.xlu2 %2608, %v2795_v7  }
  0x13   :  { %79 = vperm.xlu1 %2607, %v2800_v8   ;;  %76 = vperm.xlu0 %2606, %v2805_v9  }
  0x14   :  { %1599 = vmatpush.bf16.msra.mxu0 %v2566_v33 }
  0x18   :  { %1600 = vmatpush.bf16.msra.mxu0 %v2565_v34 }
  0x1a   :  { %91 = vperm.xlu2 %2608, %v2813_v10  }
  0x1b   :  { %88 = vperm.xlu1 %2607, %v2818_v11   ;;  %85 = vperm.xlu0 %2606, %v2823_v12  }
  0x1c   :  { %1601 = vmatpush.bf16.msra.mxu0 %v2564_v38 }
  0x20   :  { %1602 = vmatpush.bf16.msra.mxu0 %v2563_v39  ;;  %v2574_v39 = vld [vmem:[%s3823_s1 + $0x68] sm:$0xff] }
  0x22   :  { %100 = vperm.xlu2 %2608, %v2831_v13  }
  0x23   :  { %97 = vperm.xlu1 %2607, %v2836_v14   ;;  %94 = vperm.xlu0 %2606, %v2841_v15  }
  0x24   :  { %1603 = vmatpush.bf16.msra.mxu0 %v2562_v41 }
  0x28   :  { %1604 = vmatpush.bf16.msra.mxu0 %v2561_v42 }
  0x2a   :  { %109 = vperm.xlu2 %2608, %v2849_v16  }
  0x2b   :  { %106 = vperm.xlu1 %2607, %v2854_v17   ;;  %103 = vperm.xlu0 %2606, %v2859_v18  }
  0x32   :  { %118 = vperm.xlu2 %2608, %v43_v19  }
  0x33   :  { %115 = vperm.xlu1 %2607, %v42_v20   ;;  %112 = vperm.xlu0 %2606, %v2873_v21  }
  0x3a   :  { %127 = vperm.xlu2 %2608, %v2879_v22  }
  0x3b   :  { %124 = vperm.xlu1 %2607, %v2884_v23   ;;  %121 = vperm.xlu0 %2606, %v2889_v24  }
  0x42   :  { %136 = vperm.xlu2 %2608, %v2897_v25  }
  0x43   :  { %133 = vperm.xlu1 %2607, %v2902_v26   ;;  %130 = vperm.xlu0 %2606, %v2907_v27  }
  0x4a   :  { %145 = vperm.xlu2 %2608, %v2918_v29  }
  0x4b   :  { %142 = vperm.xlu1 %2607, %v51_v30   ;;  %139 = vperm.xlu0 %2606, %v50_v31  }
  0x52   :  { %2610 = vset.pattern.permute.xlu2 %v2714_v35 }
  0x53   :  { %2609 = vset.pattern.permute.xlu1 %v2715_v36  ;;  %2613 = vset.pattern.permute.xlu0 %v2716_v37 }
  0x54   :  { %509 = vperm.xlu1 %2609, %v2787_v6   ;;  %285 = vperm.xlu0 %2613, %v2787_v6  }
  0x55   :  { %730 = vperm.xlu2 %2610, %v2768_v3  }
  0x5c   :  { %2611 = vset.pattern.permute.xlu1 %v2714_v35  ;;  %288 = vperm.xlu0 %2613, %v2763_v2   ;;  %v2950_v40 = vpop.permute.xlu2 %70 }
  0x5d   :  { %733 = vperm.xlu1 %2611, %v2787_v6   ;;  %2612 = vset.pattern.permute.xlu2 %v2716_v37  ;;  %vm157_vm4 = vcmp.eq.s32.totalorder %v2950_v40, %v2976_v46  ;;  %v2592_v40 = vld [vmem:[%s3823_s1 + $0xf8] sm:$0xff] }
  0x5e   :  { %282 = vperm.xlu2 %2612, %v2768_v3   ;;  %1864 = vmatpush.bf16.msra.mxu3 %v2592_v40  ;;  %v2571_v40 = vld [vmem:[%s3823_s1 + $0x50] sm:$0xff] }
  0x64   :  { %2618 = vset.pattern.permute.xlu0 %v2715_v36  ;;  %v2962_v43 = vpop.permute.xlu2 %73 }
  0x65   :  { %2614 = vset.pattern.permute.xlu1 %v2715_v36  ;;  %506 = vperm.xlu0 %2618, %v2768_v3   ;;  %vm158_vm5 = vcmp.eq.s32.totalorder %v2962_v43, %v2976_v46 }
  0x66   :  { %512 = vperm.xlu1 %2614, %v2763_v2   ;;  %2615 = vset.pattern.permute.xlu2 %v2715_v36 }
  0x67   :  { %515 = vperm.xlu2 %2615, %v2782_v5  }
  0x6c   :  { %v2969_v44 = vpop.permute.xlu2 %82 }
  0x6d   :  { %521 = vperm.xlu0 %2618, %v2777_v4  }
  0x6e   :  { %2616 = vset.pattern.permute.xlu1 %v2714_v35 }
  0x6f   :  { %736 = vperm.xlu1 %2616, %v2763_v2   ;;  %2617 = vset.pattern.permute.xlu2 %v2714_v35 }
  0x70   :  { %739 = vperm.xlu2 %2617, %v2782_v5  }
  0x74   :  { %v2978_v47 = vpop.permute.xlu2 %91 }
  0x75   :  { %v65_v48 = vpop.permute.xlu1 %64  ;;  %v59_v49 = vpop.permute.xlu0 %58  ;;  %524 = vperm.xlu0 %2618, %v2805_v9  }
  0x76   :  { %vm153_vm0 = vcmp.eq.s32.totalorder %v59_v49, %v2976_v46  ;;  %vm155_vm3 = vcmp.eq.s32.totalorder %v65_v48, %v2976_v46  ;;  %v2277_v48 = vsel %vm157_vm4, 1.0, %v2717_v50  ;;  %v2278_v49 = vsel %vm158_vm5, 1.0, %v2717_v50 }
  0x77   :  { %2619 = vset.pattern.permute.xlu1 %v2716_v37  ;;  %v2273_v51 = vsel %vm153_vm0, 1.0, %v2717_v50  ;;  %v2275_v3 = vsel %vm155_vm3, 1.0, %v2717_v50 }
  0x78   :  { %291 = vperm.xlu1 %2619, %v2782_v5   ;;  %2620 = vset.pattern.permute.xlu2 %v2715_v36  ;;  %v249_v52 = vpack.c.bf16 %v2273_v51, %v2273_v51  ;;  %v251_v28 = vpack.c.bf16 %v2275_v3, %v2275_v3 }
  0x79   :  { %518 = vperm.xlu2 %2620, %v2758_v1  }
  0x7a   :  { %v985_v57 = vunpack.c.l.b16 %v249_v52  ;;  %v987_v31 = vunpack.c.l.b16 %v251_v28 }
  0x7c   :  { %v2987_v53 = vpop.permute.xlu2 %100 }
  0x7d   :  { %v68_v54 = vpop.permute.xlu1 %67  ;;  %v62_v55 = vpop.permute.xlu0 %61  ;;  %2627 = vset.pattern.permute.xlu0 %v2714_v35  ;;  %vm167_vm8 = vcmp.eq.s32.totalorder %v2987_v53, %v2976_v46  ;;  %v2591_v53 = vld [vmem:[%s3823_s1 + $0xf0] sm:$0xff] }
  0x7e   :  { %vm154_vm1 = vcmp.eq.s32.totalorder %v62_v55, %v2976_v46  ;;  %751 = vperm.xlu0 %2627, %v2800_v8   ;;  %vm156_vm2 = vcmp.eq.s32.totalorder %v68_v54, %v2976_v46  ;;  %v2573_v54 = vld [vmem:[%s3823_s1 + $0x60] sm:$0xff]  ;;  %v2287_v55 = vsel %vm167_vm8, 1.0, %v2717_v50  ;;  %1865 = vmatpush.bf16.msra.mxu3 %v2591_v53 }
  0x7f   :  { %v2274_v56 = vsel %vm154_vm1, 1.0, %v2717_v50  ;;  %v2276_v2 = vsel %vm156_vm2, 1.0, %v2717_v50  ;;  %v263_v3 = vpack.c.bf16 %v2287_v55, %v2287_v55 }
  0x80   :  { %v250_v58 = vpack.c.bf16 %v2274_v56, %v2274_v56  ;;  %2621 = vset.pattern.permute.xlu1 %v2714_v35  ;;  %v252_v5 = vpack.c.bf16 %v2276_v2, %v2276_v2 }
  0x81   :  { %742 = vperm.xlu1 %2621, %v2758_v1   ;;  %2622 = vset.pattern.permute.xlu2 %v2714_v35 }
  0x82   :  { %v986_v59 = vunpack.c.l.b16 %v250_v58  ;;  %745 = vperm.xlu2 %2622, %v2777_v4   ;;  %v988_v30 = vunpack.c.l.b16 %v252_v5  ;;  %v254_v58 = vpack.c.bf16 %v2278_v49, %v2278_v49 }
  0x84   :  { %v110_v60 = vpop.permute.xlu2 %109  ;;  %v1017_v61 = vpack.c.b16 %v986_v59, %v985_v57  ;;  %v1018_v33 = vpack.c.b16 %v988_v30, %v987_v31  ;;  %v253_v57 = vpack.c.bf16 %v2277_v48, %v2277_v48  ;;  %v2590_v30 = vld [vmem:[%s3823_s1 + $0xe8] sm:$0xff]  ;;  %v2589_v48 = vld [vmem:[%s3823_s1 + $0xe0] sm:$0xff] }
  0x85   :  { %v2997_v62 = vpop.permute.xlu1 %79  ;;  %v2999_v63 = vpop.permute.xlu0 %76  ;;  %vm170_vm9 = vcmp.eq.s32.totalorder %v110_v60, %v2976_v46  ;;  %1866 = vmatpush.bf16.msra.mxu3 %v2590_v30 }
  0x86   :  { %1605 = vmatmul.bf16.vlgmr.msra.gmra.mxu0 %v1017_v61  ;;  %754 = vperm.xlu0 %2627, %v2795_v7   ;;  %v2290_v56 = vsel %vm170_vm9, 1.0, %v2717_v50  ;;  %v989_v31 = vunpack.c.l.b16 %v253_v57  ;;  %vm160_vm12 = vcmp.eq.s32.totalorder %v2997_v62, %v2976_v46  ;;  %vm159_vm13 = vcmp.eq.s32.totalorder %v2999_v63, %v2976_v46  ;;  %v2569_v62 = vld [vmem:[%s3823_s1 + $0x40] sm:$0xff] }
  0x87   :  { %v266_v5 = vpack.c.bf16 %v2290_v56, %v2290_v56 }
  0x89   :  { %2623 = vset.pattern.permute.xlu1 %v2716_v37  ;;  %1867 = vmatpush.bf16.msra.mxu3 %v2589_v48 }
  0x8a   :  { %294 = vperm.xlu1 %2623, %v2758_v1   ;;  %2624 = vset.pattern.permute.xlu2 %v2716_v37  ;;  %v2576_v1 = vld [vmem:[%s3823_s1 + $0x78] sm:$0xff] }
  0x8b   :  { %297 = vperm.xlu2 %2624, %v2777_v4   ;;  %1686 = vmatpush.bf16.msra.mxu1 %v2576_v1  ;;  %v2575_v4 = vld [vmem:[%s3823_s1 + $0x70] sm:$0xff] }
  0x8c   :  { %v3010_v6 = vpop.permute.xlu2 %118 }
  0x8d   :  { %v3012_v19 = vpop.permute.xlu1 %88  ;;  %v3014_v20 = vpop.permute.xlu0 %85  ;;  %vm173_vm0 = vcmp.eq.s32.totalorder %v3010_v6, %v2976_v46  ;;  %v2581_v6 = vld [vmem:[%s3823_s1 + $0xa0] sm:$0xff] }
  0x8e   :  { %2634 = vset.pattern.permute.xlu0 %v2716_v37  ;;  %vm162_vm4 = vcmp.eq.s32.totalorder %v3014_v20, %v2976_v46 }
  0x8f   :  { %309 = vperm.xlu0 %2634, %v2823_v12   ;;  %1687 = vmatpush.bf16.msra.mxu1 %v2575_v4  ;;  %v990_v4 = vunpack.c.l.b16 %v254_v58 }
  0x92   :  { %2625 = vset.pattern.permute.xlu1 %v2715_v36 }
  0x93   :  { %527 = vperm.xlu1 %2625, %v2800_v8   ;;  %2626 = vset.pattern.permute.xlu2 %v2714_v35 }
  0x94   :  { %v3027_v32 = vpop.permute.xlu2 %127  ;;  %748 = vperm.xlu2 %2626, %v2805_v9   ;;  %1688 = vmatpush.bf16.msra.mxu1 %v2574_v39  ;;  %v3087_v39 = vunpack.c.l.b16 %v266_v5 }
  0x95   :  { %v98_v34 = vpop.permute.xlu1 %97  ;;  %v95_v38 = vpop.permute.xlu0 %94  ;;  %vm176_vm1 = vcmp.eq.s32.totalorder %v3027_v32, %v2976_v46  ;;  %v2293_v32 = vsel %vm173_vm0, 1.0, %v2717_v50 }
  0x96   :  { %vm166_vm6 = vcmp.eq.s32.totalorder %v98_v34, %v2976_v46  ;;  %vm165_vm7 = vcmp.eq.s32.totalorder %v95_v38, %v2976_v46  ;;  %1610 = vmatmul.bf16.gmra.mxu0 %v1018_v33  ;;  %v3085_v38 = vunpack.c.l.b16 %v263_v3 }
  0x97   :  { %v2286_v41 = vsel %vm166_vm6, 1.0, %v2717_v50  ;;  %v2285_v42 = vsel %vm165_vm7, 1.0, %v2717_v50  ;;  %312 = vperm.xlu0 %2634, %v2818_v11   ;;  %vm161_vm7 = vcmp.eq.s32.totalorder %v2969_v44, %v2976_v46  ;;  %v2578_v44 = vld [vmem:[%s3823_s1 + $0x88] sm:$0xff] }
  0x98   :  { %v262_v43 = vpack.c.bf16 %v2286_v41, %v2286_v41  ;;  %v261_v45 = vpack.c.bf16 %v2285_v42, %v2285_v42  ;;  %1689 = vmatpush.bf16.msra.mxu1 %v2573_v54 }
  0x9a   :  { %v3050_v51 = vunpack.c.l.b16 %v262_v43  ;;  %v3052_v52 = vunpack.c.l.b16 %v261_v45  ;;  %v2583_v43 = vld [vmem:[%s3823_s1 + $0xb0] sm:$0xff]  ;;  %v1019_v45 = vpack.c.b16 %v990_v4, %v989_v31  ;;  %v2296_v31 = vsel %vm176_vm1, 1.0, %v2717_v50 }
  0x9b   :  { %2628 = vset.pattern.permute.xlu1 %v2716_v37  ;;  %v272_v48 = vpack.c.bf16 %v2296_v31, %v2296_v31  ;;  %v2579_v31 = vld [vmem:[%s3823_s1 + $0x90] sm:$0xff] }
  0x9c   :  { %300 = vperm.xlu1 %2628, %v2805_v9   ;;  %v3064_v59 = vpop.permute.xlu2 %136  ;;  %2629 = vset.pattern.permute.xlu2 %v2716_v37  ;;  %v1023_v60 = vpack.c.b16 %v3050_v51, %v3052_v52  ;;  %v2572_v9 = vld [vmem:[%s3823_s1 + $0x58] sm:$0xff] }
  0x9d   :  { %v107_v61 = vpop.permute.xlu1 %106  ;;  %v104_v2 = vpop.permute.xlu0 %103  ;;  %303 = vperm.xlu2 %2629, %v2800_v8   ;;  %v2584_v8 = vld [vmem:[%s3823_s1 + $0xb8] sm:$0xff]  ;;  %1690 = vmatpush.bf16.msra.mxu1 %v2572_v9  ;;  %vm179_vm8 = vcmp.eq.s32.totalorder %v3064_v59, %v2976_v46  ;;  %v2282_v59 = vsel %vm162_vm4, 1.0, %v2717_v50 }
  0x9e   :  { %vm169_vm10 = vcmp.eq.s32.totalorder %v107_v61, %v2976_v46  ;;  %vm168_vm11 = vcmp.eq.s32.totalorder %v104_v2, %v2976_v46  ;;  %1775 = vmatpush.bf16.msra.mxu2 %v2584_v8  ;;  %v2570_v61 = vld [vmem:[%s3823_s1 + $0x48] sm:$0xff]  ;;  %v2588_v9 = vld [vmem:[%s3823_s1 + $0xd8] sm:$0xff] }
  0x9f   :  { %v2289_v28 = vsel %vm169_vm10, 1.0, %v2717_v50  ;;  %v2288_v1 = vsel %vm168_vm11, 1.0, %v2717_v50  ;;  %2641 = vset.pattern.permute.xlu0 %v2715_v36  ;;  %v2582_v2 = vld [vmem:[%s3823_s1 + $0xa8] sm:$0xff]  ;;  %1868 = vmatpush.bf16.msra.mxu3 %v2588_v9  ;;  %v3181_v9 = vunpack.c.l.b16 %v272_v48 }
  0xa0   :  { %v265_v33 = vpack.c.bf16 %v2289_v28, %v2289_v28  ;;  %v264_v34 = vpack.c.bf16 %v2288_v1, %v2288_v1  ;;  %545 = vperm.xlu0 %2641, %v2836_v14   ;;  %v2280_v28 = vsel %vm160_vm12, 1.0, %v2717_v50  ;;  %v2279_v1 = vsel %vm159_vm13, 1.0, %v2717_v50 }
  0xa1   :  { %1691 = vmatpush.bf16.msra.mxu1 %v2571_v40  ;;  %v256_v4 = vpack.c.bf16 %v2280_v28, %v2280_v28  ;;  %v255_v63 = vpack.c.bf16 %v2279_v1, %v2279_v1  ;;  %v269_v40 = vpack.c.bf16 %v2293_v32, %v2293_v32  ;;  %vm163_vm13 = vcmp.eq.s32.totalorder %v3012_v19, %v2976_v46 }
  0xa2   :  { %v3089_v41 = vunpack.c.l.b16 %v265_v33  ;;  %v3091_v42 = vunpack.c.l.b16 %v264_v34  ;;  %1776 = vmatpush.bf16.msra.mxu2 %v2583_v43  ;;  %v2587_v33 = vld [vmem:[%s3823_s1 + $0xd0] sm:$0xff] }
  0xa3   :  { %1869 = vmatpush.bf16.msra.mxu3 %v2587_v33  ;;  %v2585_v33 = vld [vmem:[%s3823_s1 + $0xc0] sm:$0xff] }
  0xa4   :  { %2630 = vset.pattern.permute.xlu1 %v2715_v36  ;;  %v1024_v49 = vpack.c.b16 %v3091_v42, %v3085_v38  ;;  %v1025_v54 = vpack.c.b16 %v3087_v39, %v3089_v41  ;;  %v3118_v56 = vpop.permute.xlu2 %145  ;;  %v2698_v41 = vld [vmem:[%s3822_s0 + $0x98] sm:$0xff] }
  0xa5   :  { %v116_v53 = vpop.permute.xlu1 %115  ;;  %530 = vperm.xlu1 %2630, %v2795_v7   ;;  %v113_v55 = vpop.permute.xlu0 %112  ;;  %2631 = vset.pattern.permute.xlu2 %v2715_v36  ;;  %vm182_vm9 = vcmp.eq.s32.totalorder %v3118_v56, %v2976_v46  ;;  %v2299_v56 = vsel %vm179_vm8, 1.0, %v2717_v50 }
  0xa6   :  { %vm172_vm14 = vcmp.eq.s32.totalorder %v116_v53, %v2976_v46  ;;  %vm171_vm15 = vcmp.eq.s32.totalorder %v113_v55, %v2976_v46  ;;  %1615 = vmatmul.bf16.gmra.mxu0 %v1019_v45  ;;  %533 = vperm.xlu2 %2631, %v2823_v12  }
  0xa7   :  { %v2292_v57 = vsel %vm172_vm14, 1.0, %v2717_v50  ;;  %v2291_v58 = vsel %vm171_vm15, 1.0, %v2717_v50  ;;  %1692 = vmatpush.bf16.msra.mxu1 %v2570_v61  ;;  %1777 = vmatpush.bf16.msra.mxu2 %v2582_v2  ;;  %v991_v61 = vunpack.c.l.b16 %v255_v63  ;;  %vm164_vm15 = vcmp.eq.s32.totalorder %v2978_v47, %v2976_v46 }
  0xa8   :  { %v268_v3 = vpack.c.bf16 %v2292_v57, %v2292_v57  ;;  %v267_v5 = vpack.c.bf16 %v2291_v58, %v2291_v58  ;;  %548 = vperm.xlu0 %2641, %v2831_v13   ;;  %v992_v58 = vunpack.c.l.b16 %v256_v4  ;;  %v2284_v47 = vsel %vm164_vm15, 1.0, %v2717_v50 }
  0xaa   :  { %v3146_v8 = vunpack.c.l.b16 %v268_v3  ;;  %v3148_v30 = vunpack.c.l.b16 %v267_v5  ;;  %v2586_v5 = vld [vmem:[%s3823_s1 + $0xc8] sm:$0xff]  ;;  %v1020_v32 = vpack.c.b16 %v992_v58, %v991_v61 }
  0xab   :  { %1693 = vmatpush.bf16.msra.mxu1 %v2569_v62  ;;  %1778 = vmatpush.bf16.msra.mxu2 %v2581_v6 }
  0xac   :  { %v1026_v34 = vpack.c.b16 %v3146_v8, %v3148_v30  ;;  %1870 = vmatpush.bf16.msra.mxu3 %v2586_v5  ;;  %v275_v5 = vpack.c.bf16 %v2299_v56, %v2299_v56 }
  0xad   :  { %v125_v43 = vpop.permute.xlu1 %124  ;;  %2632 = vset.pattern.permute.xlu1 %v2714_v35  ;;  %v122_v45 = vpop.permute.xlu0 %121 }
  0xae   :  { %vm175_vm2 = vcmp.eq.s32.totalorder %v125_v43, %v2976_v46  ;;  %vm174_vm3 = vcmp.eq.s32.totalorder %v122_v45, %v2976_v46  ;;  %757 = vperm.xlu1 %2632, %v2823_v12   ;;  %2633 = vset.pattern.permute.xlu2 %v2716_v37  ;;  %v2580_v12 = vld [vmem:[%s3823_s1 + $0x98] sm:$0xff] }
  0xaf   :  { %v2295_v53 = vsel %vm175_vm2, 1.0, %v2717_v50  ;;  %v2294_v55 = vsel %vm174_vm3, 1.0, %v2717_v50  ;;  %306 = vperm.xlu2 %2633, %v2795_v7   ;;  %v3170_v57 = vpop.permute.xlu2 %730  ;;  %v3179_v7 = vunpack.c.l.b16 %v269_v40  ;;  %1779 = vmatpush.bf16.msra.mxu2 %v2580_v12 }
  0xb0   :  { %v271_v2 = vpack.c.bf16 %v2295_v53, %v2295_v53  ;;  %v270_v3 = vpack.c.bf16 %v2294_v55, %v2294_v55  ;;  %2648 = vset.pattern.permute.xlu0 %v2714_v35  ;;  %1871 = vmatpush.bf16.msra.mxu3 %v2585_v33  ;;  %v2281_v55 = vsel %vm161_vm7, 1.0, %v2717_v50  ;;  %vm825_vm0 = vcmp.eq.s32.totalorder %v3170_v57, %v2976_v46 }
  0xb1   :  { %775 = vperm.xlu0 %2648, %v2859_v18   ;;  %v257_v12 = vpack.c.bf16 %v2281_v55, %v2281_v55 }
  0xb2   :  { %v3183_v28 = vunpack.c.l.b16 %v271_v2  ;;  %v3185_v1 = vunpack.c.l.b16 %v270_v3  ;;  %v2302_v2 = vsel %vm182_vm9, 1.0, %v2717_v50  ;;  %v258_v3 = vpack.c.bf16 %v2282_v59, %v2282_v59 }
  0xb3   :  { %1780 = vmatpush.bf16.msra.mxu2 %v2579_v31  ;;  %v3242_v59 = vunpack.c.l.b16 %v275_v5 }
  0xb4   :  { %v1027_v62 = vpack.c.b16 %v3185_v1, %v3179_v7  ;;  %v1028_v4 = vpack.c.b16 %v3181_v9, %v3183_v28 }
  0xb5   :  { %v134_v63 = vpop.permute.xlu1 %133  ;;  %v131_v6 = vpop.permute.xlu0 %130 }
  0xb6   :  { %vm178_vm5 = vcmp.eq.s32.totalorder %v134_v63, %v2976_v46  ;;  %vm177_vm6 = vcmp.eq.s32.totalorder %v131_v6, %v2976_v46  ;;  %2635 = vset.pattern.permute.xlu1 %v2715_v36  ;;  %1620 = vmatmul.bf16.gmra.mxu0 %v1020_v32  ;;  %v2577_v63 = vld [vmem:[%s3823_s1 + $0x80] sm:$0xff]  ;;  %v278_v6 = vpack.c.bf16 %v2302_v2, %v2302_v2 }
  0xb7   :  { %v2298_v40 = vsel %vm178_vm5, 1.0, %v2717_v50  ;;  %v2297_v43 = vsel %vm177_vm6, 1.0, %v2717_v50  ;;  %536 = vperm.xlu1 %2635, %v2818_v11   ;;  %2636 = vset.pattern.permute.xlu2 %v2715_v36 }
  0xb8   :  { %v274_v45 = vpack.c.bf16 %v2298_v40, %v2298_v40  ;;  %v273_v48 = vpack.c.bf16 %v2297_v43, %v2297_v43  ;;  %539 = vperm.xlu2 %2636, %v2813_v10   ;;  %v283_v53 = vpop.permute.xlu2 %282  ;;  %1781 = vmatpush.bf16.msra.mxu2 %v2578_v44  ;;  %v994_v43 = vunpack.c.l.b16 %v258_v3  ;;  %v993_v44 = vunpack.c.l.b16 %v257_v12 }
  0xb9   :  { %778 = vperm.xlu0 %2648, %v2854_v17   ;;  %vm377_vm12 = vcmp.eq.s32.totalorder %v283_v53, %v2976_v46  ;;  %v3247_v56 = vunpack.c.l.b16 %v278_v6 }
  0xba   :  { %v3223_v58 = vunpack.c.l.b16 %v274_v45  ;;  %v3225_v61 = vunpack.c.l.b16 %v273_v48  ;;  %v2305_v3 = vsel %vm377_vm12, 1.0, %v2717_v50 }
  0xbc   :  { %v1029_v20 = vpack.c.b16 %v3223_v58, %v3225_v61  ;;  %1782 = vmatpush.bf16.msra.mxu2 %v2577_v63  ;;  %v3458_v58 = vld [vmem:[%s3824_s2] ss:$0 sm:$0xff] }
  0xbd   :  { %v143_v32 = vpop.permute.xlu1 %142  ;;  %v140_v31 = vpop.permute.xlu0 %139 }
  0xbe   :  { %vm181_vm10 = vcmp.eq.s32.totalorder %v143_v32, %v2976_v46  ;;  %vm180_vm11 = vcmp.eq.s32.totalorder %v140_v31, %v2976_v46  ;;  %v473_v32 = vpack.c.bf16 %v2305_v3, %v2305_v3 }
  0xbf   :  { %v2301_v33 = vsel %vm181_vm10, 1.0, %v2717_v50  ;;  %v2300_v40 = vsel %vm180_vm11, 1.0, %v2717_v50  ;;  %2637 = vset.pattern.permute.xlu1 %v2714_v35 }
  0xc0   :  { %v277_v45 = vpack.c.bf16 %v2301_v33, %v2301_v33  ;;  %v276_v48 = vpack.c.bf16 %v2300_v40, %v2300_v40  ;;  %760 = vperm.xlu1 %2637, %v2818_v11   ;;  %2638 = vset.pattern.permute.xlu2 %v2714_v35  ;;  %v1021_v11 = vpack.c.b16 %v994_v43, %v993_v44  ;;  %v2283_v33 = vsel %vm163_vm13, 1.0, %v2717_v50 }
  0xc1   :  { %763 = vperm.xlu2 %2638, %v2813_v10   ;;  %v3245_v55 = vpop.permute.xlu2 %515  ;;  %2655 = vset.pattern.permute.xlu0 %v2716_v37  ;;  %v1081_v40 = vunpack.c.l.b16 %v473_v32  ;;  %v2369_v44 = vsel %vm825_vm0, 1.0, %v2717_v50 }
  0xc2   :  { %v3249_v2 = vunpack.c.l.b16 %v277_v45  ;;  %v3251_v53 = vunpack.c.l.b16 %v276_v48  ;;  %333 = vperm.xlu0 %2655, %v2849_v16   ;;  %v259_v48 = vpack.c.bf16 %v2283_v33, %v2283_v33  ;;  %vm604_vm6 = vcmp.eq.s32.totalorder %v3245_v55, %v2976_v46 }
  0xc4   :  { %v1030_v12 = vpack.c.b16 %v3251_v53, %v3242_v59 }
  0xc6   :  { %v510_v31 = vpop.permute.xlu1 %509  ;;  %1625 = vmatmul.bf16.gmra.mxu0 %v1021_v11  ;;  %v286_v63 = vpop.permute.xlu0 %285  ;;  %v260_v11 = vpack.c.bf16 %v2284_v47, %v2284_v47 }
  0xc7   :  { %vm378_vm14 = vcmp.eq.s32.totalorder %v286_v63, %v2976_v46  ;;  %v995_v63 = vunpack.c.l.b16 %v259_v48  ;;  %vm602_vm2 = vcmp.eq.s32.totalorder %v510_v31, %v2976_v46 }
  0xc8   :  { %v2306_v6 = vsel %vm378_vm14, 1.0, %v2717_v50  ;;  %2639 = vset.pattern.permute.xlu1 %v2716_v37  ;;  %v996_v5 = vunpack.c.l.b16 %v260_v11  ;;  %v2338_v48 = vsel %vm602_vm2, 1.0, %v2717_v50 }
  0xc9   :  { %v474_v43 = vpack.c.bf16 %v2306_v6, %v2306_v6  ;;  %315 = vperm.xlu1 %2639, %v2813_v10   ;;  %2640 = vset.pattern.permute.xlu2 %v2715_v36  ;;  %v921_v6 = vpack.c.bf16 %v2369_v44, %v2369_v44 }
  0xca   :  { %542 = vperm.xlu2 %2640, %v2841_v15   ;;  %v740_v19 = vpop.permute.xlu2 %739  ;;  %336 = vperm.xlu0 %2655, %v2873_v21  }
  0xcb   :  { %v1082_v45 = vunpack.c.l.b16 %v474_v43  ;;  %vm828_vm4 = vcmp.eq.s32.totalorder %v740_v19, %v2976_v46 }
  0xcd   :  { %v1113_v3 = vpack.c.b16 %v1082_v45, %v1081_v40  ;;  %v1273_v40 = vunpack.c.l.b16 %v921_v6  ;;  %v1022_v45 = vpack.c.b16 %v996_v5, %v995_v63  ;;  %v2372_v6 = vsel %vm828_vm4, 1.0, %v2717_v50 }
  0xce   :  { %v289_v32 = vpop.permute.xlu0 %288  ;;  %v924_v19 = vpack.c.bf16 %v2372_v6, %v2372_v6 }
  0xcf   :  { %v734_v10 = vpop.permute.xlu1 %733  ;;  %1694 = vmatmul.bf16.vlgmr.msra.gmra.mxu1 %v1113_v3  ;;  %v698_v3 = vpack.c.bf16 %v2338_v48, %v2338_v48  ;;  %vm379_vm8 = vcmp.eq.s32.totalorder %v289_v32, %v2976_v46 }
  0xd0   :  { %vm826_vm1 = vcmp.eq.s32.totalorder %v734_v10, %v2976_v46  ;;  %v2307_v32 = vsel %vm379_vm8, 1.0, %v2717_v50 }
  0xd1   :  { %v2370_v57 = vsel %vm826_vm1, 1.0, %v2717_v50  ;;  %2642 = vset.pattern.permute.xlu1 %v2714_v35 }
  0xd2   :  { %v922_v43 = vpack.c.bf16 %v2370_v57, %v2370_v57  ;;  %766 = vperm.xlu1 %2642, %v2841_v15   ;;  %2643 = vset.pattern.permute.xlu2 %v2714_v35 }
  0xd3   :  { %769 = vperm.xlu2 %2643, %v2836_v14   ;;  %v3283_v33 = vpop.permute.xlu2 %518  ;;  %2662 = vset.pattern.permute.xlu0 %v2715_v36 }
  0xd4   :  { %v1274_v47 = vunpack.c.l.b16 %v922_v43  ;;  %569 = vperm.xlu0 %2662, %v2889_v24   ;;  %v1178_v24 = vunpack.c.l.b16 %v698_v3  ;;  %vm605_vm11 = vcmp.eq.s32.totalorder %v3283_v33, %v2976_v46 }
  0xd6   :  { %1630 = vmatmul.bf16.gmra.mxu0 %v1022_v45  ;;  %v1305_v31 = vpack.c.b16 %v1274_v47, %v1273_v40  ;;  %v2340_v40 = vsel %vm604_vm6, 1.0, %v2717_v50  ;;  %v1276_v45 = vunpack.c.l.b16 %v924_v19 }
  0xd7   :  { %v507_v44 = vpop.permute.xlu0 %506 }
  0xd8   :  { %vm601_vm3 = vcmp.eq.s32.totalorder %v507_v44, %v2976_v46  ;;  %v513_v11 = vpop.permute.xlu1 %512  ;;  %1872 = vmatmul.bf16.vlgmr.msra.gmra.mxu3 %v1305_v31  ;;  %v700_v44 = vpack.c.bf16 %v2340_v40, %v2340_v40 }
  0xd9   :  { %v2337_v10 = vsel %vm601_vm3, 1.0, %v2717_v50  ;;  %vm603_vm5 = vcmp.eq.s32.totalorder %v513_v11, %v2976_v46 }
  0xda   :  { %v697_v57 = vpack.c.bf16 %v2337_v10, %v2337_v10  ;;  %2644 = vset.pattern.permute.xlu1 %v2716_v37  ;;  %v475_v10 = vpack.c.bf16 %v2307_v32, %v2307_v32 }
  0xdb   :  { %318 = vperm.xlu1 %2644, %v2841_v15   ;;  %2645 = vset.pattern.permute.xlu2 %v2716_v37 }
  0xdc   :  { %v1177_v5 = vunpack.c.l.b16 %v697_v57  ;;  %321 = vperm.xlu2 %2645, %v2836_v14   ;;  %v746_v63 = vpop.permute.xlu2 %745  ;;  %572 = vperm.xlu0 %2662, %v2884_v23   ;;  %v2339_v14 = vsel %vm603_vm5, 1.0, %v2717_v50 }
  0xdd   :  { %v699_v31 = vpack.c.bf16 %v2339_v14, %v2339_v14  ;;  %vm830_vm10 = vcmp.eq.s32.totalorder %v746_v63, %v2976_v46 }
  0xde   :  { %v1209_v43 = vpack.c.b16 %v1178_v24, %v1177_v5  ;;  %v1180_v24 = vunpack.c.l.b16 %v700_v44 }
  0xdf   :  { %v522_v55 = vpop.permute.xlu0 %521  ;;  %v1179_v57 = vunpack.c.l.b16 %v699_v31 }
  0xe0   :  { %1783 = vmatmul.bf16.vlgmr.msra.gmra.mxu2 %v1209_v43  ;;  %v1083_v43 = vunpack.c.l.b16 %v475_v10  ;;  %vm606_vm12 = vcmp.eq.s32.totalorder %v522_v55, %v2976_v46 }
  0xe1   :  { %v737_v15 = vpop.permute.xlu1 %736  ;;  %v2342_v40 = vsel %vm606_vm12, 1.0, %v2717_v50 }
  0xe2   :  { %vm827_vm7 = vcmp.eq.s32.totalorder %v737_v15, %v2976_v46  ;;  %v702_v33 = vpack.c.bf16 %v2342_v40, %v2342_v40 }
  0xe3   :  { %v2371_v23 = vsel %vm827_vm7, 1.0, %v2717_v50  ;;  %2646 = vset.pattern.permute.xlu1 %v2715_v36 }
  0xe4   :  { %v923_v47 = vpack.c.bf16 %v2371_v23, %v2371_v23  ;;  %551 = vperm.xlu1 %2646, %v2859_v18   ;;  %2647 = vset.pattern.permute.xlu2 %v2714_v35 }
  0xe5   :  { %772 = vperm.xlu2 %2647, %v2831_v13   ;;  %v298_v48 = vpop.permute.xlu2 %297  ;;  %2669 = vset.pattern.permute.xlu0 %v2714_v35 }
  0xe6   :  { %v1275_v3 = vunpack.c.l.b16 %v923_v47  ;;  %1635 = vmatmul.bf16.gmra.mxu0 %v1023_v60  ;;  %799 = vperm.xlu0 %2669, %v2879_v22   ;;  %v1210_v22 = vpack.c.b16 %v1180_v24, %v1179_v57  ;;  %v2374_v60 = vsel %vm830_vm10, 1.0, %v2717_v50  ;;  %vm382_vm14 = vcmp.eq.s32.totalorder %v298_v48, %v2976_v46 }
  0xe7   :  { %v525_v51 = vpop.permute.xlu0 %524  ;;  %v926_v14 = vpack.c.bf16 %v2374_v60, %v2374_v60  ;;  %v2310_v44 = vsel %vm382_vm14, 1.0, %v2717_v50 }
  0xe8   :  { %v1306_v11 = vpack.c.b16 %v1276_v45, %v1275_v3  ;;  %v1182_v3 = vunpack.c.l.b16 %v702_v33  ;;  %v478_v38 = vpack.c.bf16 %v2310_v44, %v2310_v44  ;;  %vm607_vm2 = vcmp.eq.s32.totalorder %v525_v51, %v2976_v46 }
  0xe9   :  { %v1278_v45 = vunpack.c.l.b16 %v926_v14 }
  0xea   :  { %v292_v5 = vpop.permute.xlu1 %291  ;;  %1877 = vmatmul.bf16.gmra.mxu3 %v1306_v11  ;;  %v1086_v24 = vunpack.c.l.b16 %v478_v38 }
  0xeb   :  { %vm380_vm9 = vcmp.eq.s32.totalorder %v292_v5, %v2976_v46 }
  0xec   :  { %v2308_v6 = vsel %vm380_vm9, 1.0, %v2717_v50  ;;  %2649 = vset.pattern.permute.xlu1 %v2716_v37 }
  0xed   :  { %v476_v19 = vpack.c.bf16 %v2308_v6, %v2308_v6  ;;  %324 = vperm.xlu1 %2649, %v2831_v13   ;;  %2650 = vset.pattern.permute.xlu2 %v2716_v37  ;;  %v2341_v13 = vsel %vm605_vm11, 1.0, %v2717_v50 }
  0xee   :  { %327 = vperm.xlu2 %2650, %v2859_v18   ;;  %802 = vperm.xlu0 %2669, %v2907_v27   ;;  %v749_v15 = vpop.permute.xlu2 %748  ;;  %v701_v18 = vpack.c.bf16 %v2341_v13, %v2341_v13 }
  0xef   :  { %v1084_v52 = vunpack.c.l.b16 %v476_v19  ;;  %vm831_vm15 = vcmp.eq.s32.totalorder %v749_v15, %v2976_v46 }
  0xf0   :  { %1788 = vmatmul.bf16.gmra.mxu2 %v1210_v22  ;;  %v752_v55 = vpop.permute.xlu0 %751  ;;  %v1181_v48 = vunpack.c.l.b16 %v701_v18 }
  0xf1   :  { %v1114_v63 = vpack.c.b16 %v1084_v52, %v1083_v43  ;;  %vm832_vm0 = vcmp.eq.s32.totalorder %v752_v55, %v2976_v46  ;;  %v2343_v52 = vsel %vm607_vm2, 1.0, %v2717_v50  ;;  %v2699_v55 = vld [vmem:[%s3822_s0 + $0x90] sm:$0xff] }
  0xf2   :  { %v2376_v10 = vsel %vm832_vm0, 1.0, %v2717_v50 }
  0xf3   :  { %v743_v23 = vpop.permute.xlu1 %742  ;;  %1699 = vmatmul.bf16.gmra.mxu1 %v1114_v63  ;;  %v928_v43 = vpack.c.bf16 %v2376_v10, %v2376_v10 }
  0xf4   :  { %vm829_vm13 = vcmp.eq.s32.totalorder %v743_v23, %v2976_v46 }
  0xf5   :  { %v2373_v27 = vsel %vm829_vm13, 1.0, %v2717_v50  ;;  %2651 = vset.pattern.permute.xlu1 %v2715_v36  ;;  %v1280_v63 = vunpack.c.l.b16 %v928_v43 }
  0xf6   :  { %v925_v47 = vpack.c.bf16 %v2373_v27, %v2373_v27  ;;  %554 = vperm.xlu1 %2651, %v2854_v17   ;;  %1640 = vmatmul.bf16.gmra.mxu0 %v1024_v49  ;;  %v2375_v49 = vsel %vm831_vm15, 1.0, %v2717_v50 }
  0xf7   :  { %2652 = vset.pattern.permute.xlu2 %v2715_v36  ;;  %v304_v32 = vpop.permute.xlu2 %303  ;;  %2676 = vset.pattern.permute.xlu0 %v2716_v37  ;;  %v927_v6 = vpack.c.bf16 %v2375_v49, %v2375_v49 }
  0xf8   :  { %v1277_v31 = vunpack.c.l.b16 %v925_v47  ;;  %557 = vperm.xlu2 %2652, %v2849_v16   ;;  %357 = vperm.xlu0 %2676, %v2902_v26   ;;  %v1211_v26 = vpack.c.b16 %v1182_v3, %v1181_v48  ;;  %vm384_vm4 = vcmp.eq.s32.totalorder %v304_v32, %v2976_v46  ;;  %v755_v14 = vpop.permute.xlu0 %754 }
  0xf9   :  { %v1279_v15 = vunpack.c.l.b16 %v927_v6  ;;  %v2312_v39 = vsel %vm384_vm4, 1.0, %v2717_v50  ;;  %vm833_vm10 = vcmp.eq.s32.totalorder %v755_v14, %v2976_v46 }
  0xfa   :  { %v1307_v11 = vpack.c.b16 %v1278_v45, %v1277_v31 }
  0xfc   :  { %v295_v42 = vpop.permute.xlu1 %294  ;;  %1882 = vmatmul.bf16.gmra.mxu3 %v1307_v11 }
  0xfd   :  { %vm381_vm1 = vcmp.eq.s32.totalorder %v295_v42, %v2976_v46 }
  0xfe   :  { %v2309_v57 = vsel %vm381_vm1, 1.0, %v2717_v50  ;;  %2653 = vset.pattern.permute.xlu1 %v2714_v35 }
  0xff   :  { %v477_v5 = vpack.c.bf16 %v2309_v57, %v2309_v57  ;;  %781 = vperm.xlu1 %2653, %v2849_v16   ;;  %v703_v16 = vpack.c.bf16 %v2343_v52, %v2343_v52 }
 0x100   :  { %1793 = vmatmul.bf16.gmra.mxu2 %v1211_v26  ;;  %2654 = vset.pattern.permute.xlu2 %v2716_v37  ;;  %v534_v19 = vpop.permute.xlu2 %533 }
 0x101   :  { %v1085_v22 = vunpack.c.l.b16 %v477_v5  ;;  %330 = vperm.xlu2 %2654, %v2854_v17   ;;  %360 = vperm.xlu0 %2676, %v2897_v25   ;;  %v1308_v25 = vpack.c.b16 %v1280_v63, %v1279_v15  ;;  %v1183_v40 = vunpack.c.l.b16 %v703_v16  ;;  %vm610_vm6 = vcmp.eq.s32.totalorder %v534_v19, %v2976_v46  ;;  %v2700_v5 = vld [vmem:[%s3822_s0 + $0xa0] sm:$0xff] }
 0x102   :  { %v2346_v44 = vsel %vm610_vm6, 1.0, %v2717_v50 }
 0x103   :  { %v1115_v60 = vpack.c.b16 %v1086_v24, %v1085_v22  ;;  %v706_v3 = vpack.c.bf16 %v2346_v44, %v2346_v44 }
 0x105   :  { %v528_v13 = vpop.permute.xlu1 %527  ;;  %1704 = vmatmul.bf16.gmra.mxu1 %v1115_v60  ;;  %v1186_v10 = vunpack.c.l.b16 %v706_v3 }
 0x106   :  { %vm608_vm3 = vcmp.eq.s32.totalorder %v528_v13, %v2976_v46  ;;  %1645 = vmatmul.bf16.gmra.mxu0 %v1025_v54 }
 0x107   :  { %v2344_v51 = vsel %vm608_vm3, 1.0, %v2717_v50  ;;  %2656 = vset.pattern.permute.xlu1 %v2715_v36 }
 0x108   :  { %v704_v17 = vpack.c.bf16 %v2344_v51, %v2344_v51  ;;  %560 = vperm.xlu1 %2656, %v2873_v21   ;;  %v480_v21 = vpack.c.bf16 %v2312_v39, %v2312_v39 }
 0x109   :  { %2657 = vset.pattern.permute.xlu2 %v2715_v36  ;;  %2683 = vset.pattern.permute.xlu0 %v2715_v36  ;;  %v307_v54 = vpop.permute.xlu2 %306 }
 0x10a   :  { %v1184_v23 = vunpack.c.l.b16 %v704_v17  ;;  %563 = vperm.xlu2 %2657, %v2698_v41   ;;  %593 = vperm.xlu0 %2683, %v2918_v29   ;;  %v1088_v45 = vunpack.c.l.b16 %v480_v21  ;;  %v310_v29 = vpop.permute.xlu0 %309  ;;  %vm385_vm7 = vcmp.eq.s32.totalorder %v307_v54, %v2976_v46 }
 0x10b   :  { %vm386_vm8 = vcmp.eq.s32.totalorder %v310_v29, %v2976_v46  ;;  %v2313_v38 = vsel %vm385_vm7, 1.0, %v2717_v50 }
 0x10c   :  { %1887 = vmatmul.bf16.gmra.mxu3 %v1308_v25  ;;  %v1212_v27 = vpack.c.b16 %v1184_v23, %v1183_v40  ;;  %v2314_v42 = vsel %vm386_vm8, 1.0, %v2717_v50  ;;  %v481_v26 = vpack.c.bf16 %v2313_v38, %v2313_v38  ;;  %v2701_v25 = vld [vmem:[%s3822_s0 + $0xa8] sm:$0xff] }
 0x10d   :  { %v482_v8 = vpack.c.bf16 %v2314_v42, %v2314_v42 }
 0x10e   :  { %v301_v18 = vpop.permute.xlu1 %300  ;;  %v1089_v19 = vunpack.c.l.b16 %v481_v26 }
 0x10f   :  { %vm383_vm5 = vcmp.eq.s32.totalorder %v301_v18, %v2976_v46  ;;  %v1090_v22 = vunpack.c.l.b16 %v482_v8 }
 0x110   :  { %v2311_v33 = vsel %vm383_vm5, 1.0, %v2717_v50  ;;  %2658 = vset.pattern.permute.xlu1 %v2714_v35  ;;  %1798 = vmatmul.bf16.gmra.mxu2 %v1212_v27 }
 0x111   :  { %v479_v47 = vpack.c.bf16 %v2311_v33, %v2311_v33  ;;  %784 = vperm.xlu1 %2658, %v2699_v55   ;;  %v1117_v13 = vpack.c.b16 %v1090_v22, %v1089_v19 }
 0x112   :  { %2659 = vset.pattern.permute.xlu2 %v2714_v35  ;;  %v540_v32 = vpop.permute.xlu2 %539  ;;  %v313_v16 = vpop.permute.xlu0 %312 }
 0x113   :  { %v1087_v31 = vunpack.c.l.b16 %v479_v47  ;;  %787 = vperm.xlu2 %2659, %v2698_v41   ;;  %vm612_vm12 = vcmp.eq.s32.totalorder %v540_v32, %v2976_v46  ;;  %vm387_vm2 = vcmp.eq.s32.totalorder %v313_v16, %v2976_v46 }
 0x114   :  { %v2348_v17 = vsel %vm612_vm12, 1.0, %v2717_v50  ;;  %v2315_v42 = vsel %vm387_vm2, 1.0, %v2717_v50 }
 0x115   :  { %v1116_v48 = vpack.c.b16 %v1088_v45, %v1087_v31  ;;  %v708_v23 = vpack.c.bf16 %v2348_v17, %v2348_v17  ;;  %v3415_v45 = vpop.f32.mrf.mxu0  ;;  %v483_v26 = vpack.c.bf16 %v2315_v42, %v2315_v42  ;;  %v2704_v17 = vld [vmem:[%s3822_s0 + $0xc0] sm:$0xff] }
 0x116   :  { %1650 = vmatmul.bf16.gmra.mxu0 %v1026_v34  ;;  %v2377_v34 = vsel %vm833_vm10, 1.0, %v2717_v50 }
 0x117   :  { %v531_v11 = vpop.permute.xlu1 %530  ;;  %1709 = vmatmul.bf16.gmra.mxu1 %v1116_v48  ;;  %v929_v43 = vpack.c.bf16 %v2377_v34, %v2377_v34  ;;  %v1188_v21 = vunpack.c.l.b16 %v708_v23  ;;  %v2702_v48 = vld [vmem:[%s3822_s0 + $0xb8] sm:$0xff]  ;;  %v1607_v23 = vadd.f32 %v3458_v58, %v3415_v45 }
 0x118   :  { %vm609_vm9 = vcmp.eq.s32.totalorder %v531_v11, %v2976_v46 }
 0x119   :  { %v2345_v49 = vsel %vm609_vm9, 1.0, %v2717_v50  ;;  %2660 = vset.pattern.permute.xlu1 %v2716_v37  ;;  %v1281_v15 = vunpack.c.l.b16 %v929_v43 }
 0x11a   :  { %v705_v57 = vpack.c.bf16 %v2345_v49, %v2345_v49  ;;  %339 = vperm.xlu1 %2660, %v2698_v41   ;;  %v546_v18 = vpop.permute.xlu0 %545 }
 0x11b   :  { %2661 = vset.pattern.permute.xlu2 %v2715_v36  ;;  %v764_v30 = vpop.permute.xlu2 %763  ;;  %vm614_vm0 = vcmp.eq.s32.totalorder %v546_v18, %v2976_v46 }
 0x11c   :  { %v1185_v24 = vunpack.c.l.b16 %v705_v57  ;;  %566 = vperm.xlu2 %2661, %v2700_v5   ;;  %vm836_vm14 = vcmp.eq.s32.totalorder %v764_v30, %v2976_v46  ;;  %v2350_v29 = vsel %vm614_vm0, 1.0, %v2717_v50 }
 0x11d   :  { %v710_v11 = vpack.c.bf16 %v2350_v29, %v2350_v29  ;;  %v3435_v9 = vpop.f32.mrf.mxu0 }
 0x11e   :  { %v1213_v6 = vpack.c.b16 %v1186_v10, %v1185_v24  ;;  %v2703_v10 = vld [vmem:[%s3822_s0 + $0xb0] sm:$0xff] }
 0x11f   :  { %v1190_v30 = vunpack.c.l.b16 %v710_v11 }
 0x120   :  { %v758_v52 = vpop.permute.xlu1 %757  ;;  %1803 = vmatmul.bf16.gmra.mxu2 %v1213_v6 }
 0x121   :  { %vm834_vm11 = vcmp.eq.s32.totalorder %v758_v52, %v2976_v46 }
 0x122   :  { %v2378_v60 = vsel %vm834_vm11, 1.0, %v2717_v50  ;;  %2663 = vset.pattern.permute.xlu1 %v2714_v35  ;;  %v549_v6 = vpop.permute.xlu0 %548 }
 0x123   :  { %v930_v63 = vpack.c.bf16 %v2378_v60, %v2378_v60  ;;  %790 = vperm.xlu1 %2663, %v2700_v5   ;;  %vm615_vm10 = vcmp.eq.s32.totalorder %v549_v6, %v2976_v46 }
 0x124   :  { %2664 = vset.pattern.permute.xlu2 %v2714_v35  ;;  %v543_v14 = vpop.permute.xlu2 %542  ;;  %v2351_v29 = vsel %vm615_vm10, 1.0, %v2717_v50 }
 0x125   :  { %v1282_v51 = vunpack.c.l.b16 %v930_v63  ;;  %793 = vperm.xlu2 %2664, %v2701_v25   ;;  %vm613_vm15 = vcmp.eq.s32.totalorder %v543_v14, %v2976_v46 }
 0x126   :  { %1655 = vmatmul.bf16.gmra.mxu0 %v1027_v62  ;;  %v2380_v62 = vsel %vm836_vm14, 1.0, %v2717_v50  ;;  %v2349_v55 = vsel %vm613_vm15, 1.0, %v2717_v50 }
 0x127   :  { %1714 = vmatmul.bf16.gmra.mxu1 %v1117_v13  ;;  %v1309_v40 = vpack.c.b16 %v1282_v51, %v1281_v15  ;;  %v932_v33 = vpack.c.bf16 %v2380_v62, %v2380_v62  ;;  %v709_v3 = vpack.c.bf16 %v2349_v55, %v2349_v55  ;;  %v3449_v13 = vpop.f32.mrf.mxu0 }
 0x129   :  { %v537_v39 = vpop.permute.xlu1 %536  ;;  %1892 = vmatmul.bf16.gmra.mxu3 %v1309_v40  ;;  %v1284_v31 = vunpack.c.l.b16 %v932_v33  ;;  %v1189_v8 = vunpack.c.l.b16 %v709_v3  ;;  %v2705_v40 = vld [vmem:[%s3822_s0 + $0xc8] sm:$0xff] }
 0x12a   :  { %vm611_vm13 = vcmp.eq.s32.totalorder %v537_v39, %v2976_v46 }
 0x12b   :  { %v2347_v41 = vsel %vm611_vm13, 1.0, %v2717_v50  ;;  %2665 = vset.pattern.permute.xlu1 %v2716_v37 }
 0x12c   :  { %v707_v54 = vpack.c.bf16 %v2347_v41, %v2347_v41  ;;  %342 = vperm.xlu1 %2665, %v2700_v5   ;;  %v1215_v5 = vpack.c.b16 %v1190_v30, %v1189_v8  ;;  %v2707_v30 = vld [vmem:[%s3822_s0 + $0xd8] sm:$0xff] }
 0x12d   :  { %2666 = vset.pattern.permute.xlu2 %v2716_v37  ;;  %v770_v7 = vpop.permute.xlu2 %769 }
 0x12e   :  { %v1187_v1 = vunpack.c.l.b16 %v707_v54  ;;  %345 = vperm.xlu2 %2666, %v2701_v25   ;;  %vm838_vm4 = vcmp.eq.s32.totalorder %v770_v7, %v2976_v46  ;;  %v776_v25 = vpop.permute.xlu0 %775 }
 0x12f   :  { %v2382_v19 = vsel %vm838_vm4, 1.0, %v2717_v50  ;;  %vm840_vm8 = vcmp.eq.s32.totalorder %v776_v25, %v2976_v46  ;;  %v3477_v55 = vpop.f32.mrf.mxu0 }
 0x130   :  { %v1214_v27 = vpack.c.b16 %v1188_v21, %v1187_v1  ;;  %v934_v60 = vpack.c.bf16 %v2382_v19, %v2382_v19  ;;  %v2384_v1 = vsel %vm840_vm8, 1.0, %v2717_v50 }
 0x131   :  { %v936_v45 = vpack.c.bf16 %v2384_v1, %v2384_v1 }
 0x132   :  { %v761_v47 = vpop.permute.xlu1 %760  ;;  %1808 = vmatmul.bf16.gmra.mxu2 %v1214_v27  ;;  %v1286_v51 = vunpack.c.l.b16 %v934_v60 }
 0x133   :  { %vm835_vm1 = vcmp.eq.s32.totalorder %v761_v47, %v2976_v46  ;;  %v1288_v11 = vunpack.c.l.b16 %v936_v45 }
 0x134   :  { %v2379_v32 = vsel %vm835_vm1, 1.0, %v2717_v50  ;;  %2667 = vset.pattern.permute.xlu1 %v2715_v36 }
 0x135   :  { %v931_v44 = vpack.c.bf16 %v2379_v32, %v2379_v32  ;;  %575 = vperm.xlu1 %2667, %v2702_v48  }
 0x136   :  { %1660 = vmatmul.bf16.gmra.mxu0 %v1028_v4  ;;  %2668 = vset.pattern.permute.xlu2 %v2714_v35  ;;  %v322_v38 = vpop.permute.xlu2 %321  ;;  %v1091_v4 = vunpack.c.l.b16 %v483_v26  ;;  %v2706_v26 = vld [vmem:[%s3822_s0 + $0xd0] sm:$0xff]  ;;  %v779_v53 = vpop.permute.xlu0 %778 }
 0x137   :  { %v1283_v49 = vunpack.c.l.b16 %v931_v44  ;;  %796 = vperm.xlu2 %2668, %v2703_v10   ;;  %vm390_vm6 = vcmp.eq.s32.totalorder %v322_v38, %v2976_v46  ;;  %v3483_v38 = vld [vmem:[%s3822_s0 + $0xf0] sm:$0xff]  ;;  %vm841_vm1 = vcmp.eq.s32.totalorder %v779_v53, %v2976_v46 }
 0x138   :  { %596 = vperm.xlu0 %2683, %v3483_v38  }
 0x139   :  { %v1310_v57 = vpack.c.b16 %v1284_v31, %v1283_v49 }
 0x13b   :  { %v316_v34 = vpop.permute.xlu1 %315  ;;  %1897 = vmatmul.bf16.gmra.mxu3 %v1310_v57 }
 0x13c   :  { %vm388_vm3 = vcmp.eq.s32.totalorder %v316_v34, %v2976_v46  ;;  %v3501_v34 = vpop.f32.mrf.mxu0 }
 0x13d   :  { %v2316_v28 = vsel %vm388_vm3, 1.0, %v2717_v50  ;;  %2670 = vset.pattern.permute.xlu1 %v2716_v37 }
 0x13e   :  { %v484_v24 = vpack.c.bf16 %v2316_v28, %v2316_v28  ;;  %348 = vperm.xlu1 %2670, %v2703_v10  }
 0x13f   :  { %2671 = vset.pattern.permute.xlu2 %v2716_v37  ;;  %v773_v22 = vpop.permute.xlu2 %772 }
 0x140   :  { %v1092_v43 = vunpack.c.l.b16 %v484_v24  ;;  %351 = vperm.xlu2 %2671, %v2702_v48   ;;  %vm839_vm7 = vcmp.eq.s32.totalorder %v773_v22, %v2976_v46  ;;  %v711_v48 = vpack.c.bf16 %v2351_v29, %v2351_v29  ;;  %2690 = vset.pattern.permute.xlu0 %v2713_v0  ;;  %v2708_v29 = vld [vmem:[%s3822_s0 + $0xe0] sm:$0xff] }
 0x141   :  { %v2383_v7 = vsel %vm839_vm7, 1.0, %v2717_v50 }
 0x142   :  { %1813 = vmatmul.bf16.gmra.mxu2 %v1215_v5  ;;  %v1118_v52 = vpack.c.b16 %v1092_v43, %v1091_v4  ;;  %v935_v47 = vpack.c.bf16 %v2383_v7, %v2383_v7  ;;  %v1191_v10 = vunpack.c.l.b16 %v711_v48  ;;  %v3506_v5 = vld [vmem:[%s3822_s0 + $0xf8] sm:$0xff]  ;;  %v1612_v48 = vadd.f32 %v3458_v58, %v3449_v13 }
 0x143   :  { %151 = vperm.xlu0 %2690, %v3506_v5  }
 0x144   :  { %v767_v15 = vpop.permute.xlu1 %766  ;;  %1719 = vmatmul.bf16.gmra.mxu1 %v1118_v52  ;;  %v1287_v3 = vunpack.c.l.b16 %v935_v47  ;;  %v3519_v25 = vpop.f32.mrf.mxu0 }
 0x145   :  { %vm837_vm5 = vcmp.eq.s32.totalorder %v767_v15, %v2976_v46  ;;  %v334_v15 = vpop.permute.xlu0 %333 }
 0x146   :  { %v2381_v63 = vsel %vm837_vm5, 1.0, %v2717_v50  ;;  %2672 = vset.pattern.permute.xlu1 %v2715_v36  ;;  %1665 = vmatmul.bf16.gmra.mxu0 %v1029_v20  ;;  %v2318_v20 = vsel %vm390_vm6, 1.0, %v2717_v50  ;;  %v1312_v59 = vpack.c.b16 %v1288_v11, %v1287_v3  ;;  %vm394_vm0 = vcmp.eq.s32.totalorder %v334_v15, %v2976_v46  ;;  %v3545_v3 = vld [vmem:[%s3825_s3] sm:$0xff] }
 0x147   :  { %v933_v16 = vpack.c.bf16 %v2381_v63, %v2381_v63  ;;  %578 = vperm.xlu1 %2672, %v2704_v17   ;;  %v486_v41 = vpack.c.bf16 %v2318_v20, %v2318_v20 }
 0x148   :  { %2673 = vset.pattern.permute.xlu2 %v2715_v36  ;;  %v328_v14 = vpop.permute.xlu2 %327 }
 0x149   :  { %v1285_v61 = vunpack.c.l.b16 %v933_v16  ;;  %581 = vperm.xlu2 %2673, %v2705_v40   ;;  %v1094_v27 = vunpack.c.l.b16 %v486_v41  ;;  %vm392_vm12 = vcmp.eq.s32.totalorder %v328_v14, %v2976_v46 }
 0x14a   :  { %v2320_v8 = vsel %vm392_vm12, 1.0, %v2717_v50 }
 0x14b   :  { %v1311_v39 = vpack.c.b16 %v1286_v51, %v1285_v61  ;;  %v488_v24 = vpack.c.bf16 %v2320_v8, %v2320_v8  ;;  %v3829_v61 = vpack.c.b16 %v3247_v56, %v3249_v2  ;;  %2695 = vset.pattern.permute.xlu0 %v2714_v35  ;;  %v2322_v2 = vsel %vm394_vm0, 1.0, %v2717_v50 }
 0x14c   :  { %v1695_v54 = vpop.f32.mrf.mxu1  ;;  %v490_v47 = vpack.c.bf16 %v2322_v2, %v2322_v2 }
 0x14d   :  { %v3468_v21 = vadd.f32 %v1695_v54, %v1607_v23  ;;  %v319_v18 = vpop.permute.xlu1 %318  ;;  %1902 = vmatmul.bf16.gmra.mxu3 %v1311_v39  ;;  %v1096_v52 = vunpack.c.l.b16 %v488_v24  ;;  %v1609_v39 = vadd.f32 %v3458_v58, %v3435_v9 }
 0x14e   :  { %vm389_vm9 = vcmp.eq.s32.totalorder %v319_v18, %v2976_v46 }
 0x14f   :  { %v2317_v62 = vsel %vm389_vm9, 1.0, %v2717_v50  ;;  %2674 = vset.pattern.permute.xlu1 %v2714_v35 }
 0x150   :  { %v485_v33 = vpack.c.bf16 %v2317_v62, %v2317_v62  ;;  %805 = vperm.xlu1 %2674, %v2705_v40   ;;  %v2385_v62 = vsel %vm841_vm1, 1.0, %v2717_v50 }
 0x151   :  { %2675 = vset.pattern.permute.xlu2 %v2716_v37  ;;  %v937_v11 = vpack.c.bf16 %v2385_v62, %v2385_v62 }
 0x152   :  { %v1093_v32 = vunpack.c.l.b16 %v485_v33  ;;  %354 = vperm.xlu2 %2675, %v2704_v17   ;;  %v558_v31 = vpop.permute.xlu2 %557 }
 0x153   :  { %vm618_vm14 = vcmp.eq.s32.totalorder %v558_v31, %v2976_v46 }
 0x154   :  { %v1119_v44 = vpack.c.b16 %v1094_v27, %v1093_v32  ;;  %v2354_v51 = vsel %vm618_vm14, 1.0, %v2717_v50  ;;  %v1697_v40 = vpop.f32.mrf.mxu1 }
 0x155   :  { %v714_v23 = vpack.c.bf16 %v2354_v51, %v2354_v51  ;;  %v1698_v54 = vadd.f32 %v1697_v40, %v1609_v39  ;;  %v1614_v51 = vadd.f32 %v3458_v58, %v3477_v55 }
 0x156   :  { %v552_v42 = vpop.permute.xlu1 %551  ;;  %1670 = vmatmul.bf16.gmra.mxu0 %v1030_v12  ;;  %1724 = vmatmul.bf16.gmra.mxu1 %v1119_v44 }
 0x157   :  { %vm616_vm11 = vcmp.eq.s32.totalorder %v552_v42, %v2976_v46  ;;  %v1194_v7 = vunpack.c.l.b16 %v714_v23  ;;  %v3550_v42 = vld [vmem:[%s3825_s3 + $0x8] sm:$0xff] }
 0x158   :  { %v2352_v49 = vsel %vm616_vm11, 1.0, %v2717_v50  ;;  %2677 = vset.pattern.permute.xlu1 %v2715_v36 }
 0x159   :  { %v712_v57 = vpack.c.bf16 %v2352_v49, %v2352_v49  ;;  %584 = vperm.xlu1 %2677, %v2706_v26  }
 0x15a   :  { %2678 = vset.pattern.permute.xlu2 %v2715_v36 }
 0x15b   :  { %v1192_v12 = vunpack.c.l.b16 %v712_v57  ;;  %587 = vperm.xlu2 %2678, %v2707_v30   ;;  %v331_v28 = vpop.permute.xlu2 %330  ;;  %v1873_v43 = vpop.f32.mrf.mxu3 }
 0x15c   :  { %vm393_vm15 = vcmp.eq.s32.totalorder %v331_v28, %v2976_v46  ;;  %v1289_v28 = vunpack.c.l.b16 %v937_v11 }
 0x15d   :  { %1907 = vmatmul.bf16.gmra.mxu3 %v1312_v59  ;;  %v1216_v4 = vpack.c.b16 %v1192_v12, %v1191_v10  ;;  %v2321_v56 = vsel %vm393_vm15, 1.0, %v2717_v50 }
 0x15e   :  { %v489_v33 = vpack.c.bf16 %v2321_v56, %v2321_v56 }
 0x15f   :  { %v325_v6 = vpop.permute.xlu1 %324  ;;  %1818 = vmatmul.bf16.gmra.mxu2 %v1216_v4 }
 0x160   :  { %vm391_vm13 = vcmp.eq.s32.totalorder %v325_v6, %v2976_v46  ;;  %v1097_v57 = vunpack.c.l.b16 %v489_v33  ;;  %v1617_v33 = vadd.f32 %v3458_v58, %v3501_v34 }
 0x161   :  { %v2319_v19 = vsel %vm391_vm13, 1.0, %v2717_v50  ;;  %2679 = vset.pattern.permute.xlu1 %v2714_v35 }
 0x162   :  { %v487_v22 = vpack.c.bf16 %v2319_v19, %v2319_v19  ;;  %808 = vperm.xlu1 %2679, %v2706_v26   ;;  %v1098_v26 = vunpack.c.l.b16 %v490_v47 }
 0x163   :  { %v1784_v60 = vpop.f32.mrf.mxu2  ;;  %2680 = vset.pattern.permute.xlu2 %v2714_v35 }
 0x164   :  { %v1095_v63 = vunpack.c.l.b16 %v487_v22  ;;  %v1785_v16 = vadd.f32 %v1784_v60, %v3468_v21  ;;  %811 = vperm.xlu2 %2680, %v2707_v30   ;;  %v3517_v17 = vpop.permute.xlu2 %563  ;;  %v1875_v21 = vpop.f32.mrf.mxu3  ;;  %v1121_v22 = vpack.c.b16 %v1098_v26, %v1097_v57 }
 0x165   :  { %vm620_vm4 = vcmp.eq.s32.totalorder %v3517_v17, %v2976_v46 }
 0x166   :  { %v1874_v14 = vadd.f32 %v1873_v43, %v1785_v16  ;;  %1675 = vmatmul.bf16.gmra.mxu0 %v3829_v61  ;;  %v1120_v20 = vpack.c.b16 %v1096_v52, %v1095_v63  ;;  %v337_v52 = vpop.permute.xlu0 %336  ;;  %v2356_v63 = vsel %vm620_vm4, 1.0, %v2717_v50  ;;  %v2709_v16 = vld [vmem:[%s3822_s0 + $0xe8] sm:$0xff] }
 0x167   :  { %v716_v40 = vpack.c.bf16 %v2356_v63, %v2356_v63  ;;  %vm395_vm9 = vcmp.eq.s32.totalorder %v337_v52, %v2976_v46 }
 0x168   :  { %v555_v41 = vpop.permute.xlu1 %554  ;;  %1729 = vmatmul.bf16.gmra.mxu1 %v1120_v20  ;;  %v1953_v31 = vmax.f32 %v1874_v14, 0.0 }
 0x169   :  { %vm617_vm2 = vcmp.eq.s32.totalorder %v555_v41, %v2976_v46 }
 0x16a   :  { %v2353_v18 = vsel %vm617_vm2, 1.0, %v2717_v50  ;;  %2681 = vset.pattern.permute.xlu1 %v2716_v37  ;;  %v1987_v13 = vmul.f32 %v3545_v3, %v1953_v31 }
 0x16b   :  { %v713_v9 = vpack.c.bf16 %v2353_v18, %v2353_v18  ;;  %363 = vperm.xlu1 %2681, %v2707_v30   ;;  %v1786_v1 = vpop.f32.mrf.mxu2 }
 0x16c   :  { %v1787_v27 = vadd.f32 %v1786_v1, %v1698_v54  ;;  %2682 = vset.pattern.permute.xlu2 %v2715_v36  ;;  %v1196_v54 = vunpack.c.l.b16 %v716_v40 }
 0x16d   :  { %v1193_v45 = vunpack.c.l.b16 %v713_v9  ;;  %590 = vperm.xlu2 %2682, %v2708_v29   ;;  %v788_v32 = vpop.permute.xlu2 %787  ;;  %v1878_v30 = vpop.f32.mrf.mxu3 }
 0x16e   :  { %v1876_v44 = vadd.f32 %v1875_v21, %v1787_v27  ;;  %vm844_vm6 = vcmp.eq.s32.totalorder %v788_v32, %v2976_v46 }
 0x16f   :  { %v1217_v49 = vpack.c.b16 %v1194_v7, %v1193_v45  ;;  %v570_v7 = vpop.permute.xlu0 %569  ;;  %v2388_v1 = vsel %vm844_vm6, 1.0, %v2717_v50 }
 0x170   :  { %v1954_v10 = vmax.f32 %v1876_v44, 0.0  ;;  %v1700_v59 = vpop.f32.mrf.mxu1  ;;  %vm622_vm8 = vcmp.eq.s32.totalorder %v570_v7, %v2976_v46  ;;  %v940_v32 = vpack.c.bf16 %v2388_v1, %v2388_v1 }
 0x171   :  { %v1701_v53 = vadd.f32 %v1700_v59, %v1612_v48  ;;  %v782_v12 = vpop.permute.xlu1 %781  ;;  %1823 = vmatmul.bf16.gmra.mxu2 %v1217_v49  ;;  %v2358_v57 = vsel %vm622_vm8, 1.0, %v2717_v50 }
 0x172   :  { %v1988_v8 = vmul.f32 %v3550_v42, %v1954_v10  ;;  %vm842_vm3 = vcmp.eq.s32.totalorder %v782_v12, %v2976_v46 }
 0x173   :  { %v2386_v4 = vsel %vm842_vm3, 1.0, %v2717_v50  ;;  %2684 = vset.pattern.permute.xlu1 %v2714_v35  ;;  %v1789_v24 = vpop.f32.mrf.mxu2 }
 0x174   :  { %v3559_v6 = vmax.f32 %v1987_v13, %v1988_v8  ;;  %v938_v43 = vpack.c.bf16 %v2386_v4, %v2386_v4  ;;  %v1790_v19 = vadd.f32 %v1789_v24, %v1701_v53  ;;  %814 = vperm.xlu1 %2684, %v2708_v29   ;;  %v1292_v53 = vunpack.c.l.b16 %v940_v32 }
 0x175   :  { %2685 = vset.pattern.permute.xlu2 %v2714_v35  ;;  %v1880_v41 = vpop.f32.mrf.mxu3  ;;  %v2323_v13 = vsel %vm395_vm9, 1.0, %v2717_v50 }
 0x176   :  { %v1290_v60 = vunpack.c.l.b16 %v938_v43  ;;  %v1879_v15 = vadd.f32 %v1878_v30, %v1790_v19  ;;  %817 = vperm.xlu2 %2685, %v2709_v16   ;;  %v567_v17 = vpop.permute.xlu2 %566  ;;  %v1619_v43 = vadd.f32 %v3458_v58, %v3519_v25  ;;  %v1621_v19 = vpop.f32.mrf.mxu0 }
 0x177   :  { %vm621_vm7 = vcmp.eq.s32.totalorder %v567_v17, %v2976_v46 }
 0x178   :  { %v1702_v14 = vpop.f32.mrf.mxu1  ;;  %1734 = vmatmul.bf16.gmra.mxu1 %v1121_v22  ;;  %v1313_v61 = vpack.c.b16 %v1290_v60, %v1289_v28  ;;  %v1955_v21 = vmax.f32 %v1879_v15, 0.0  ;;  %v2357_v10 = vsel %vm621_vm7, 1.0, %v2717_v50  ;;  %v718_v28 = vpack.c.bf16 %v2358_v57, %v2358_v57 }
 0x179   :  { %v1703_v20 = vadd.f32 %v1702_v14, %v1614_v51  ;;  %v717_v30 = vpack.c.bf16 %v2357_v10, %v2357_v10 }
 0x17a   :  { %v561_v23 = vpop.permute.xlu1 %560  ;;  %1912 = vmatmul.bf16.gmra.mxu3 %v1313_v61  ;;  %v1989_v45 = vmul.f32 %v3545_v3, %v1955_v21  ;;  %v1198_v63 = vunpack.c.l.b16 %v718_v28 }
 0x17b   :  { %vm619_vm5 = vcmp.eq.s32.totalorder %v561_v23, %v2976_v46  ;;  %v1791_v39 = vpop.f32.mrf.mxu2  ;;  %v1197_v60 = vunpack.c.l.b16 %v717_v30 }
 0x17c   :  { %v2355_v56 = vsel %vm619_vm5, 1.0, %v2717_v50  ;;  %v1792_v2 = vadd.f32 %v1791_v39, %v1703_v20  ;;  %2686 = vset.pattern.permute.xlu1 %v2716_v37  ;;  %v573_v39 = vpop.permute.xlu0 %572 }
 0x17d   :  { %v715_v55 = vpack.c.bf16 %v2355_v56, %v2355_v56  ;;  %366 = vperm.xlu1 %2686, %v2708_v29   ;;  %v1219_v23 = vpack.c.b16 %v1198_v63, %v1197_v60  ;;  %vm623_vm2 = vcmp.eq.s32.totalorder %v573_v39, %v2976_v46 }
 0x17e   :  { %v1881_v18 = vadd.f32 %v1880_v41, %v1792_v2  ;;  %2687 = vset.pattern.permute.xlu2 %v2716_v37  ;;  %v3603_v21 = vpop.f32.mrf.mxu0 }
 0x17f   :  { %v1195_v9 = vunpack.c.l.b16 %v715_v55  ;;  %369 = vperm.xlu2 %2687, %v2709_v16   ;;  %v794_v62 = vpop.permute.xlu2 %793  ;;  %v1883_v49 = vpop.f32.mrf.mxu3 }
 0x180   :  { %v1956_v27 = vmax.f32 %v1881_v18, 0.0  ;;  %vm846_vm12 = vcmp.eq.s32.totalorder %v794_v62, %v2976_v46 }
 0x181   :  { %v1218_v47 = vpack.c.b16 %v1196_v54, %v1195_v9  ;;  %v2390_v2 = vsel %vm846_vm12, 1.0, %v2717_v50  ;;  %v1622_v54 = vadd.f32 %v3458_v58, %v1621_v19  ;;  %v2359_v19 = vsel %vm623_vm2, 1.0, %v2717_v50 }
 0x182   :  { %v1990_v29 = vmul.f32 %v3550_v42, %v1956_v27  ;;  %v1705_v31 = vpop.f32.mrf.mxu1 }
 0x183   :  { %v1706_v44 = vadd.f32 %v1705_v31, %v1617_v33  ;;  %v785_v48 = vpop.permute.xlu1 %784  ;;  %1828 = vmatmul.bf16.gmra.mxu2 %v1218_v47  ;;  %v1794_v34 = vpop.f32.mrf.mxu2 }
 0x184   :  { %v3581_v11 = vmax.f32 %v1989_v45, %v1990_v29  ;;  %vm843_vm10 = vcmp.eq.s32.totalorder %v785_v48, %v2976_v46 }
 0x185   :  { %v2387_v26 = vsel %vm843_vm10, 1.0, %v2717_v50  ;;  %v1795_v59 = vadd.f32 %v1794_v34, %v1706_v44  ;;  %2688 = vset.pattern.permute.xlu1 %v2715_v36  ;;  %v491_v36 = vpack.c.bf16 %v2323_v13, %v2323_v13 }
 0x186   :  { %v939_v12 = vpack.c.bf16 %v2387_v26, %v2387_v26  ;;  %599 = vperm.xlu1 %2688, %v3506_v5  }
 0x187   :  { %v1884_v8 = vadd.f32 %v1883_v49, %v1795_v59  ;;  %2689 = vset.pattern.permute.xlu2 %v2713_v0  ;;  %v1099_v0 = vunpack.c.l.b16 %v491_v36  ;;  %v1885_v14 = vpop.f32.mrf.mxu3  ;;  %v800_v49 = vpop.permute.xlu0 %799 }
 0x188   :  { %v1291_v4 = vunpack.c.l.b16 %v939_v12  ;;  %148 = vperm.xlu2 %2689, %v3483_v38   ;;  %v346_v24 = vpop.permute.xlu2 %345  ;;  %vm848_vm0 = vcmp.eq.s32.totalorder %v800_v49, %v2976_v46  ;;  %v1626_v12 = vpop.f32.mrf.mxu0 }
 0x189   :  { %v1957_v25 = vmax.f32 %v1884_v8, 0.0  ;;  %vm398_vm14 = vcmp.eq.s32.totalorder %v346_v24, %v2976_v46 }
 0x18a   :  { %v1707_v22 = vpop.f32.mrf.mxu1  ;;  %v1314_v52 = vpack.c.b16 %v1292_v53, %v1291_v4  ;;  %v2326_v10 = vsel %vm398_vm14, 1.0, %v2717_v50 }
 0x18b   :  { %v1708_v15 = vadd.f32 %v1707_v22, %v1619_v43  ;;  %v1796_v16 = vpop.f32.mrf.mxu2  ;;  %v1991_v18 = vmul.f32 %v3545_v3, %v1957_v25  ;;  %v1627_v43 = vadd.f32 %v3458_v58, %v1626_v12 }
 0x18c   :  { %v340_v51 = vpop.permute.xlu1 %339  ;;  %1917 = vmatmul.bf16.gmra.mxu3 %v1314_v52 }
 0x18d   :  { %v1797_v17 = vadd.f32 %v1796_v16, %v1708_v15  ;;  %vm396_vm11 = vcmp.eq.s32.totalorder %v340_v51, %v2976_v46  ;;  %v719_v51 = vpack.c.bf16 %v2359_v19, %v2359_v19 }
 0x18e   :  { %v2324_v61 = vsel %vm396_vm11, 1.0, %v2717_v50  ;;  %2691 = vset.pattern.permute.xlu1 %v2714_v35 }
 0x18f   :  { %v1886_v20 = vadd.f32 %v1885_v14, %v1797_v17  ;;  %v492_v40 = vpack.c.bf16 %v2324_v61, %v2324_v61  ;;  %820 = vperm.xlu1 %2691, %v3483_v38   ;;  %v1888_v32 = vpop.f32.mrf.mxu3  ;;  %v1199_v39 = vunpack.c.l.b16 %v719_v51 }
 0x190   :  { %2692 = vset.pattern.permute.xlu2 %v2714_v35  ;;  %v942_v35 = vpack.c.bf16 %v2390_v2, %v2390_v2  ;;  %v1628_v25 = vpop.f32.mrf.mxu0 }
 0x191   :  { %v1958_v41 = vmax.f32 %v1886_v20, 0.0  ;;  %v1100_v56 = vunpack.c.l.b16 %v492_v40  ;;  %823 = vperm.xlu2 %2692, %v3506_v5   ;;  %v797_v55 = vpop.permute.xlu2 %796  ;;  %v2600_v20 = vld [vmem:[%s3826_s4 + $0x38] sm:$0xff]  ;;  %v1629_v2 = vadd.f32 %v3458_v58, %v1628_v25 }
 0x192   :  { %v1294_v44 = vunpack.c.l.b16 %v942_v35  ;;  %vm847_vm15 = vcmp.eq.s32.totalorder %v797_v55, %v2976_v46  ;;  %2255 = vmatpush.bf16.msrb.mxu0 %v2600_v20 }
 0x193   :  { %v1992_v7 = vmul.f32 %v3550_v42, %v1958_v41  ;;  %1833 = vmatmul.bf16.gmra.mxu2 %v1219_v23  ;;  %v1122_v9 = vpack.c.b16 %v1100_v56, %v1099_v0  ;;  %v1799_v1 = vpop.f32.mrf.mxu2  ;;  %v803_v23 = vpop.permute.xlu0 %802 }
 0x194   :  { %v1710_v62 = vpop.f32.mrf.mxu1  ;;  %vm849_vm10 = vcmp.eq.s32.totalorder %v803_v23, %v2976_v46 }
 0x195   :  { %v3607_v27 = vmax.f32 %v1991_v18, %v1992_v7  ;;  %v1711_v33 = vadd.f32 %v1710_v62, %v1622_v54  ;;  %v791_v47 = vpop.permute.xlu1 %790  ;;  %1739 = vmatmul.bf16.gmra.mxu1 %v1122_v9 }
 0x196   :  { %vm845_vm13 = vcmp.eq.s32.totalorder %v791_v47, %v2976_v46 }
 0x197   :  { %v1800_v45 = vadd.f32 %v1799_v1, %v1711_v33  ;;  %v2389_v29 = vsel %vm845_vm13, 1.0, %v2717_v50  ;;  %2693 = vset.pattern.permute.xlu1 %v2716_v37  ;;  %v3632_v15 = vpop.f32.mrf.mxu3 }
 0x198   :  { %v941_v31 = vpack.c.bf16 %v2389_v29, %v2389_v29  ;;  %372 = vperm.xlu1 %2693, %v3483_v38   ;;  %v494_v38 = vpack.c.bf16 %v2326_v10, %v2326_v10 }
 0x199   :  { %v3614_v48 = vadd.f32 %v1888_v32, %v1800_v45  ;;  %2694 = vset.pattern.permute.xlu2 %v2716_v37  ;;  %v2391_v37 = vsel %vm847_vm15, 1.0, %v2717_v50  ;;  %v1631_v32 = vpop.f32.mrf.mxu0 }
 0x19a   :  { %v1293_v34 = vunpack.c.l.b16 %v941_v31  ;;  %375 = vperm.xlu2 %2694, %v3506_v5   ;;  %v352_v57 = vpop.permute.xlu2 %351  ;;  %v2392_v5 = vsel %vm848_vm0, 1.0, %v2717_v50  ;;  %v1102_v30 = vunpack.c.l.b16 %v494_v38  ;;  %v943_v4 = vpack.c.bf16 %v2391_v37, %v2391_v37 }
 0x19b   :  { %v3619_v26 = vpop.f32.mrf.mxu2  ;;  %v944_v24 = vpack.c.bf16 %v2392_v5, %v2392_v5  ;;  %vm400_vm4 = vcmp.eq.s32.totalorder %v352_v57, %v2976_v46  ;;  %v1632_v25 = vadd.f32 %v3458_v58, %v1631_v32 }
 0x19c   :  { %v3621_v59 = vpop.f32.mrf.mxu1  ;;  %v1315_v53 = vpack.c.b16 %v1294_v44, %v1293_v34  ;;  %v1295_v17 = vunpack.c.l.b16 %v943_v4  ;;  %v2328_v18 = vsel %vm400_vm4, 1.0, %v2717_v50  ;;  %v358_v34 = vpop.permute.xlu0 %357 }
 0x19d   :  { %v1296_v0 = vunpack.c.l.b16 %v944_v24  ;;  %v496_v47 = vpack.c.bf16 %v2328_v18, %v2328_v18  ;;  %vm402_vm7 = vcmp.eq.s32.totalorder %v358_v34, %v2976_v46 }
 0x19e   :  { %v343_v13 = vpop.permute.xlu1 %342  ;;  %1922 = vmatmul.bf16.gmra.mxu3 %v1315_v53 }
 0x19f   :  { %vm397_vm1 = vcmp.eq.s32.totalorder %v343_v13, %v2976_v46  ;;  %v1316_v56 = vpack.c.b16 %v1296_v0, %v1295_v17  ;;  %v1104_v49 = vunpack.c.l.b16 %v496_v47  ;;  %v2393_v0 = vsel %vm849_vm10, 1.0, %v2717_v50 }
 0x1a0   :  { %v2325_v8 = vsel %vm397_vm1, 1.0, %v2717_v50 }
 0x1a1   :  { %v493_v28 = vpack.c.bf16 %v2325_v8, %v2325_v8 }
 0x1a3   :  { %v1101_v36 = vunpack.c.l.b16 %v493_v28  ;;  %v582_v22 = vpop.permute.xlu2 %581  ;;  %v1804_v52 = vpop.f32.mrf.mxu2  ;;  %v2330_v28 = vsel %vm402_vm7, 1.0, %v2717_v50 }
 0x1a4   :  { %v1715_v60 = vpop.f32.mrf.mxu1  ;;  %vm626_vm6 = vcmp.eq.s32.totalorder %v582_v22, %v2976_v46  ;;  %v498_v17 = vpack.c.bf16 %v2330_v28, %v2330_v28 }
 0x1a5   :  { %v1716_v63 = vadd.f32 %v1715_v60, %v1627_v43  ;;  %v1123_v16 = vpack.c.b16 %v1102_v30, %v1101_v36  ;;  %v2362_v53 = vsel %vm626_vm6, 1.0, %v2717_v50  ;;  %v1633_v36 = vpop.f32.mrf.mxu0 }
 0x1a6   :  { %v722_v8 = vpack.c.bf16 %v2362_v53, %v2362_v53 }
 0x1a7   :  { %v576_v14 = vpop.permute.xlu1 %575  ;;  %1744 = vmatmul.bf16.gmra.mxu1 %v1123_v16  ;;  %v1805_v61 = vadd.f32 %v1804_v52, %v1716_v63  ;;  %v3657_v63 = vpop.permute.xlu0 %360 }
 0x1a8   :  { %vm624_vm3 = vcmp.eq.s32.totalorder %v576_v14, %v2976_v46  ;;  %v1202_v52 = vunpack.c.l.b16 %v722_v8  ;;  %vm403_vm2 = vcmp.eq.s32.totalorder %v3657_v63, %v2976_v46 }
 0x1a9   :  { %v2360_v40 = vsel %vm624_vm3, 1.0, %v2717_v50 }
 0x1aa   :  { %v720_v41 = vpack.c.bf16 %v2360_v40, %v2360_v40  ;;  %v945_v40 = vpack.c.bf16 %v2393_v0, %v2393_v0 }
 0x1ab   :  { %v1806_v62 = vpop.f32.mrf.mxu2 }
 0x1ac   :  { %v1200_v55 = vunpack.c.l.b16 %v720_v41  ;;  %v1717_v54 = vpop.f32.mrf.mxu1  ;;  %v1893_v9 = vpop.f32.mrf.mxu3  ;;  %v1106_v41 = vunpack.c.l.b16 %v498_v17  ;;  %v2599_v17 = vld [vmem:[%s3826_s4 + $0x30] sm:$0xff] }
 0x1ad   :  { %v1718_v7 = vadd.f32 %v1717_v54, %v1629_v2  ;;  %v355_v1 = vpop.permute.xlu2 %354  ;;  %v1894_v35 = vadd.f32 %v1893_v9, %v1805_v61  ;;  %2256 = vmatpush.bf16.msrb.mxu0 %v2599_v17 }
 0x1ae   :  { %1927 = vmatmul.bf16.gmra.mxu3 %v1316_v56  ;;  %v1220_v33 = vpack.c.b16 %v1200_v55, %v1199_v39  ;;  %vm401_vm8 = vcmp.eq.s32.totalorder %v355_v1, %v2976_v46 }
 0x1af   :  { %v1807_v45 = vadd.f32 %v1806_v62, %v1718_v7  ;;  %v1961_v38 = vmax.f32 %v1894_v35, 0.0  ;;  %v2329_v43 = vsel %vm401_vm8, 1.0, %v2717_v50  ;;  %v1297_v7 = vunpack.c.l.b16 %v945_v40  ;;  %v1636_v62 = vpop.f32.mrf.mxu0 }
 0x1b0   :  { %v349_v29 = vpop.permute.xlu1 %348  ;;  %1838 = vmatmul.bf16.gmra.mxu2 %v1220_v33  ;;  %v497_v51 = vpack.c.bf16 %v2329_v43, %v2329_v43  ;;  %v594_v33 = vpop.permute.xlu0 %593 }
 0x1b1   :  { %vm399_vm5 = vcmp.eq.s32.totalorder %v349_v29, %v2976_v46  ;;  %v1995_v4 = vmul.f32 %v3545_v3, %v1961_v38  ;;  %vm630_vm15 = vcmp.eq.s32.totalorder %v594_v33, %v2976_v46  ;;  %v2331_v33 = vsel %vm403_vm2, 1.0, %v2717_v50 }
 0x1b2   :  { %v2327_v31 = vsel %vm399_vm5, 1.0, %v2717_v50  ;;  %v1105_v39 = vunpack.c.l.b16 %v497_v51  ;;  %vm2195_vm2 = vcmask 1043459  }
 0x1b3   :  { %v495_v44 = vpack.c.bf16 %v2327_v31, %v2327_v31  ;;  %v1634_v31 = vadd.f32 %v3458_v58, %v1633_v36  ;;  %v1637_v36 = vadd.f32 %v3458_v58, %v1636_v62 }
 0x1b4   :  { %v1895_v57 = vpop.f32.mrf.mxu3  ;;  %v1125_v1 = vpack.c.b16 %v1106_v41, %v1105_v39  ;;  %v2366_v39 = vsel %vm630_vm15, 1.0, %v2717_v50 }
 0x1b5   :  { %v1103_v10 = vunpack.c.l.b16 %v495_v44  ;;  %v1896_v12 = vadd.f32 %v1895_v57, %v1807_v45  ;;  %v588_v13 = vpop.permute.xlu2 %587  ;;  %v1809_v16 = vpop.f32.mrf.mxu2 }
 0x1b6   :  { %vm628_vm12 = vcmp.eq.s32.totalorder %v588_v13, %v2976_v46 }
 0x1b7   :  { %v1124_v37 = vpack.c.b16 %v1104_v49, %v1103_v10  ;;  %v1962_v5 = vmax.f32 %v1896_v12, 0.0  ;;  %v2364_v29 = vsel %vm628_vm12, 1.0, %v2717_v50  ;;  %v1638_v28 = vpop.f32.mrf.mxu0 }
 0x1b8   :  { %v724_v34 = vpack.c.bf16 %v2364_v29, %v2364_v29 }
 0x1b9   :  { %v579_v30 = vpop.permute.xlu1 %578  ;;  %1749 = vmatmul.bf16.gmra.mxu1 %v1124_v37  ;;  %v1996_v24 = vmul.f32 %v3550_v42, %v1962_v5 }
 0x1ba   :  { %vm625_vm9 = vcmp.eq.s32.totalorder %v579_v30, %v2976_v46  ;;  %v1204_v37 = vunpack.c.l.b16 %v724_v34  ;;  %v3669_v30 = vpop.permute.xlu0 %596 }
 0x1bb   :  { %v2361_v19 = vsel %vm625_vm9, 1.0, %v2717_v50  ;;  %v3655_v22 = vmax.f32 %v1995_v4, %v1996_v24  ;;  %vm631_vm10 = vcmp.eq.s32.totalorder %v3669_v30, %v2976_v46 }
 0x1bc   :  { %v721_v60 = vpack.c.bf16 %v2361_v19, %v2361_v19 }
 0x1bd   :  { %v1811_v47 = vpop.f32.mrf.mxu2 }
 0x1be   :  { %v1201_v14 = vunpack.c.l.b16 %v721_v60  ;;  %v812_v61 = vpop.permute.xlu2 %811  ;;  %v1898_v23 = vpop.f32.mrf.mxu3 }
 0x1bf   :  { %vm852_vm14 = vcmp.eq.s32.totalorder %v812_v61, %v2976_v46 }
 0x1c0   :  { %v1221_v20 = vpack.c.b16 %v1202_v52, %v1201_v14  ;;  %v2396_v43 = vsel %vm852_vm14, 1.0, %v2717_v50 }
 0x1c1   :  { %v1720_v56 = vpop.f32.mrf.mxu1  ;;  %v948_v0 = vpack.c.bf16 %v2396_v43, %v2396_v43 }
 0x1c2   :  { %v1721_v2 = vadd.f32 %v1720_v56, %v1632_v25  ;;  %v806_v55 = vpop.permute.xlu1 %805  ;;  %1843 = vmatmul.bf16.gmra.mxu2 %v1221_v20 }
 0x1c3   :  { %vm850_vm11 = vcmp.eq.s32.totalorder %v806_v55, %v2976_v46 }
 0x1c4   :  { %v1810_v54 = vadd.f32 %v1809_v16, %v1721_v2  ;;  %v2394_v18 = vsel %vm850_vm11, 1.0, %v2717_v50  ;;  %v1300_v2 = vunpack.c.l.b16 %v948_v0  ;;  %v2598_v0 = vld [vmem:[%s3826_s4 + $0x28] sm:$0xff] }
 0x1c5   :  { %v946_v9 = vpack.c.bf16 %v2394_v18, %v2394_v18  ;;  %v1814_v52 = vpop.f32.mrf.mxu2  ;;  %2257 = vmatpush.bf16.msrb.mxu0 %v2598_v0 }
 0x1c6   :  { %v1899_v35 = vadd.f32 %v1898_v23, %v1810_v54  ;;  %v1900_v57 = vpop.f32.mrf.mxu3 }
 0x1c7   :  { %v1298_v45 = vunpack.c.l.b16 %v946_v9  ;;  %v591_v32 = vpop.permute.xlu2 %590  ;;  %v152_v9 = vpop.permute.xlu0 %151 }
 0x1c8   :  { %v1963_v13 = vmax.f32 %v1899_v35, 0.0  ;;  %vm629_vm0 = vcmp.eq.s32.totalorder %v591_v32, %v2976_v46  ;;  %v1639_v35 = vadd.f32 %v3458_v58, %v1638_v28  ;;  %vm184_vm3 = vcmp.eq.s32.totalorder %v152_v9, %v2976_v46 }
 0x1c9   :  { %v1722_v44 = vpop.f32.mrf.mxu1  ;;  %1754 = vmatmul.bf16.gmra.mxu1 %v1125_v1  ;;  %v1317_v49 = vpack.c.b16 %v1298_v45, %v1297_v7  ;;  %v2365_v23 = vsel %vm629_vm0, 1.0, %v2717_v50  ;;  %v726_v7 = vpack.c.bf16 %v2366_v39, %v2366_v39  ;;  %vm2191_vm0 = vcmask 1041409  }
 0x1ca   :  { %v1723_v10 = vadd.f32 %v1722_v44, %v1634_v31  ;;  %v1997_v60 = vmul.f32 %v3545_v3, %v1963_v13  ;;  %v725_v18 = vpack.c.bf16 %v2365_v23, %v2365_v23 }
 0x1cb   :  { %v585_v53 = vpop.permute.xlu1 %584  ;;  %1932 = vmatmul.bf16.gmra.mxu3 %v1317_v49  ;;  %v1206_v49 = vunpack.c.l.b16 %v726_v7 }
 0x1cc   :  { %v1812_v38 = vadd.f32 %v1811_v47, %v1723_v10  ;;  %vm627_vm13 = vcmp.eq.s32.totalorder %v585_v53, %v2976_v46  ;;  %v1641_v47 = vpop.f32.mrf.mxu0  ;;  %v1205_v31 = vunpack.c.l.b16 %v725_v18  ;;  %v499_v10 = vpack.c.bf16 %v2331_v33, %v2331_v33 }
 0x1cd   :  { %v2363_v12 = vsel %vm627_vm13, 1.0, %v2717_v50  ;;  %v1816_v45 = vpop.f32.mrf.mxu2  ;;  %v2304_v53 = vsel %vm184_vm3, 1.0, %v2717_v50  ;;  %vm2197_vm3 = vcmask 1044484  }
 0x1ce   :  { %v1901_v5 = vadd.f32 %v1900_v57, %v1812_v38  ;;  %v723_v8 = vpack.c.bf16 %v2363_v12, %v2363_v12  ;;  %v1107_v28 = vunpack.c.l.b16 %v499_v10 }
 0x1d0   :  { %v1964_v4 = vmax.f32 %v1901_v5, 0.0  ;;  %v1203_v24 = vunpack.c.l.b16 %v723_v8  ;;  %v818_v19 = vpop.permute.xlu2 %817  ;;  %v1903_v14 = vpop.f32.mrf.mxu3  ;;  %v1223_v5 = vpack.c.b16 %v1206_v49, %v1205_v31  ;;  %v280_v8 = vpack.c.bf16 %v2304_v53, %v2304_v53 }
 0x1d1   :  { %vm854_vm5 = vcmp.eq.s32.totalorder %v818_v19, %v2976_v46 }
 0x1d2   :  { %v1998_v16 = vmul.f32 %v3550_v42, %v1964_v4  ;;  %v1222_v51 = vpack.c.b16 %v1204_v37, %v1203_v24  ;;  %v2398_v43 = vsel %vm854_vm5, 1.0, %v2717_v50  ;;  %v1016_v23 = vunpack.c.l.b16 %v280_v8 }
 0x1d3   :  { %v1725_v61 = vpop.f32.mrf.mxu1  ;;  %vm2201_vm5 = vcmask 1046534  }
 0x1d4   :  { %v3680_v25 = vmax.f32 %v1997_v60, %v1998_v16  ;;  %v1726_v20 = vadd.f32 %v1725_v61, %v1637_v36  ;;  %v809_v40 = vpop.permute.xlu1 %808  ;;  %1848 = vmatmul.bf16.gmra.mxu2 %v1222_v51  ;;  %v950_v61 = vpack.c.bf16 %v2398_v43, %v2398_v43 }
 0x1d5   :  { %vm851_vm1 = vcmp.eq.s32.totalorder %v809_v40, %v2976_v46 }
 0x1d6   :  { %v1815_v41 = vadd.f32 %v1814_v52, %v1726_v20  ;;  %v2395_v56 = vsel %vm851_vm1, 1.0, %v2717_v50  ;;  %v1642_v52 = vadd.f32 %v3458_v58, %v1641_v47  ;;  %v1302_v7 = vunpack.c.l.b16 %v950_v61 }
 0x1d7   :  { %v947_v55 = vpack.c.bf16 %v2395_v56, %v2395_v56  ;;  %vm2193_vm1 = vcmask 1042434  }
 0x1d8   :  { %v1904_v54 = vadd.f32 %v1903_v14, %v1815_v41  ;;  %v1905_v34 = vpop.f32.mrf.mxu3  ;;  %v1643_v14 = vpop.f32.mrf.mxu0 }
 0x1d9   :  { %v1299_v1 = vunpack.c.l.b16 %v947_v55  ;;  %v370_v62 = vpop.permute.xlu2 %369  ;;  %v1644_v33 = vadd.f32 %v3458_v58, %v1643_v14 }
 0x1da   :  { %v1965_v12 = vmax.f32 %v1904_v54, 0.0  ;;  %vm406_vm8 = vcmp.eq.s32.totalorder %v370_v62, %v2976_v46 }
 0x1db   :  { %v1727_v29 = vpop.f32.mrf.mxu1  ;;  %v1318_v32 = vpack.c.b16 %v1300_v2, %v1299_v1 }
 0x1dc   :  { %v1728_v44 = vadd.f32 %v1727_v29, %v1639_v35  ;;  %v1999_v16 = vmul.f32 %v3545_v3, %v1965_v12 }
 0x1dd   :  { %v364_v63 = vpop.permute.xlu1 %363  ;;  %1937 = vmatmul.bf16.gmra.mxu3 %v1318_v32 }
 0x1de   :  { %v1817_v57 = vadd.f32 %v1816_v45, %v1728_v44  ;;  %vm404_vm4 = vcmp.eq.s32.totalorder %v364_v63, %v2976_v46  ;;  %v2334_v45 = vsel %vm406_vm8, 1.0, %v2717_v50 }
 0x1df   :  { %v2332_v38 = vsel %vm404_vm4, 1.0, %v2717_v50  ;;  %v502_v44 = vpack.c.bf16 %v2334_v45, %v2334_v45  ;;  %vm2199_vm4 = vcmask 1045509  }
 0x1e0   :  { %v1906_v13 = vadd.f32 %v1905_v34, %v1817_v57  ;;  %v500_v37 = vpack.c.bf16 %v2332_v38, %v2332_v38  ;;  %v1908_v2 = vpop.f32.mrf.mxu3  ;;  %v1646_v34 = vpop.f32.mrf.mxu0 }
 0x1e1   :  { %v1110_v38 = vunpack.c.l.b16 %v502_v44 }
 0x1e2   :  { %v1966_v4 = vmax.f32 %v1906_v13, 0.0  ;;  %v1108_v24 = vunpack.c.l.b16 %v500_v37  ;;  %v149_v36 = vpop.permute.xlu2 %148  ;;  %v1819_v60 = vpop.f32.mrf.mxu2  ;;  %v3720_v13 = vld [vmem:[%s3824_s2] ss:$0 sm:$0xff] }
 0x1e3   :  { %vm183_vm6 = vcmp.eq.s32.totalorder %v149_v36, %v2976_v46  ;;  %v1647_v37 = vadd.f32 %v3720_v13, %v1646_v34 }
 0x1e4   :  { %v2000_v19 = vmul.f32 %v3550_v42, %v1966_v4  ;;  %1853 = vmatmul.bf16.gmra.mxu2 %v1223_v5  ;;  %v1126_v51 = vpack.c.b16 %v1108_v24, %v1107_v28  ;;  %v2303_v17 = vsel %vm183_vm6, 1.0, %v2717_v50  ;;  %v2367_v28 = vsel %vm631_vm10, 1.0, %v2717_v50 }
 0x1e5   :  { %v1730_v20 = vpop.f32.mrf.mxu1  ;;  %v279_v40 = vpack.c.bf16 %v2303_v17, %v2303_v17  ;;  %v727_v0 = vpack.c.bf16 %v2367_v28, %v2367_v28  ;;  %vm2203_vm6 = vcmask 1047559  }
 0x1e6   :  { %v3706_v39 = vmax.f32 %v1999_v16, %v2000_v19  ;;  %v1731_v41 = vadd.f32 %v1730_v20, %v1642_v52  ;;  %v815_v56 = vpop.permute.xlu1 %814  ;;  %1759 = vmatmul.bf16.gmra.mxu1 %v1126_v51 }
 0x1e7   :  { %vm853_vm7 = vcmp.eq.s32.totalorder %v815_v56, %v2976_v46  ;;  %v1015_v55 = vunpack.c.l.b16 %v279_v40  ;;  %v1207_v40 = vunpack.c.l.b16 %v727_v0 }
 0x1e8   :  { %v1820_v54 = vadd.f32 %v1819_v60, %v1731_v41  ;;  %v2397_v18 = vsel %vm853_vm7, 1.0, %v2717_v50  ;;  %v1910_v62 = vpop.f32.mrf.mxu3  ;;  %v1648_v17 = vpop.f32.mrf.mxu0 }
 0x1e9   :  { %v949_v9 = vpack.c.bf16 %v2397_v18, %v2397_v18  ;;  %v1032_v1 = vpack.c.b16 %v1016_v23, %v1015_v55  ;;  %v1649_v20 = vadd.f32 %v3720_v13, %v1648_v17 }
 0x1ea   :  { %v1909_v35 = vadd.f32 %v1908_v2, %v1820_v54  ;;  %v1821_v29 = vpop.f32.mrf.mxu2 }
 0x1eb   :  { %v1301_v47 = vunpack.c.l.b16 %v949_v9  ;;  %1680 = vmatmul.bf16.gmra.mxu0 %v1032_v1  ;;  %v824_v60 = vpop.permute.xlu2 %823 }
 0x1ec   :  { %v1967_v53 = vmax.f32 %v1909_v35, 0.0  ;;  %vm856_vm12 = vcmp.eq.s32.totalorder %v824_v60, %v2976_v46 }
 0x1ed   :  { %v1732_v32 = vpop.f32.mrf.mxu1  ;;  %v1319_v31 = vpack.c.b16 %v1302_v7, %v1301_v47  ;;  %v2400_v2 = vsel %vm856_vm12, 1.0, %v2717_v50 }
 0x1ee   :  { %v1733_v49 = vadd.f32 %v1732_v32, %v1644_v33  ;;  %v2001_v30 = vmul.f32 %v3545_v3, %v1967_v53  ;;  %v952_v9 = vpack.c.bf16 %v2400_v2, %v2400_v2  ;;  %v2020_v33 = vrot.slane %v3559_v6, 4 }
 0x1ef   :  { %v367_v63 = vpop.permute.xlu1 %366  ;;  %1942 = vmatmul.bf16.gmra.mxu3 %v1319_v31 }
 0x1f0   :  { %v1822_v10 = vadd.f32 %v1821_v29, %v1733_v49  ;;  %vm405_vm9 = vcmp.eq.s32.totalorder %v367_v63, %v2976_v46  ;;  %v1304_v32 = vunpack.c.l.b16 %v952_v9  ;;  %v1651_v31 = vpop.f32.mrf.mxu0 }
 0x1f1   :  { %v2333_v57 = vsel %vm405_vm9, 1.0, %v2717_v50 }
 0x1f2   :  { %v1911_v58 = vadd.f32 %v1910_v62, %v1822_v10  ;;  %v501_v12 = vpack.c.bf16 %v2333_v57, %v2333_v57  ;;  %v2021_v62 = vmax.f32 %v3559_v6, %v2020_v33 }
 0x1f4   :  { %v1968_v5 = vmax.f32 %v1911_v58, 0.0  ;;  %v1109_v8 = vunpack.c.l.b16 %v501_v12  ;;  %v1824_v4 = vpop.f32.mrf.mxu2  ;;  %v376_v35 = vpop.permute.xlu2 %375 }
 0x1f5   :  { %v1735_v24 = vpop.f32.mrf.mxu1  ;;  %vm408_vm14 = vcmp.eq.s32.totalorder %v376_v35, %v2976_v46  ;;  %v2027_v35 = vrot.slane %v3581_v11, 4 }
 0x1f6   :  { %v2002_v43 = vmul.f32 %v3550_v42, %v1968_v5  ;;  %v1736_v36 = vadd.f32 %v1735_v24, %v1647_v37  ;;  %v1127_v52 = vpack.c.b16 %v1110_v38, %v1109_v8  ;;  %v2336_v10 = vsel %vm408_vm14, 1.0, %v2717_v50 }
 0x1f7   :  { %v504_v38 = vpack.c.bf16 %v2336_v10, %v2336_v10  ;;  %v2022_v5 = vrot.slane %v2021_v62, 2 }
 0x1f8   :  { %v3726_v16 = vmax.f32 %v2001_v30, %v2002_v43  ;;  %v600_v19 = vpop.permute.xlu1 %599  ;;  %1764 = vmatmul.bf16.gmra.mxu1 %v1127_v52  ;;  %v1825_v51 = vadd.f32 %v1824_v4, %v1736_v36  ;;  %v1653_v43 = vpop.f32.mrf.mxu0 }
 0x1f9   :  { %vm632_vm11 = vcmp.eq.s32.totalorder %v600_v19, %v2976_v46  ;;  %v1112_v24 = vunpack.c.l.b16 %v504_v38  ;;  %v2023_v52 = vmax.f32 %v2021_v62, %v2022_v5  ;;  %v1652_v19 = vadd.f32 %v3720_v13, %v1651_v31 }
 0x1fa   :  { %v2368_v14 = vsel %vm632_vm11, 1.0, %v2717_v50  ;;  %v1654_v2 = vadd.f32 %v3720_v13, %v1653_v43 }
 0x1fb   :  { %v728_v61 = vpack.c.bf16 %v2368_v14, %v2368_v14 }
 0x1fc   :  { %v1826_v18 = vpop.f32.mrf.mxu2 }
 0x1fd   :  { %v1208_v23 = vunpack.c.l.b16 %v728_v61  ;;  %v1737_v41 = vpop.f32.mrf.mxu1  ;;  %v1913_v56 = vpop.f32.mrf.mxu3 }
 0x1fe   :  { %v1738_v55 = vadd.f32 %v1737_v41, %v1649_v20  ;;  %v1914_v54 = vadd.f32 %v1913_v56, %v1825_v51 }
 0x1ff   :  { %v1224_v7 = vpack.c.b16 %v1208_v23, %v1207_v40 }
 0x200   :  { %v1827_v1 = vadd.f32 %v1826_v18, %v1738_v55  ;;  %v1969_v49 = vmax.f32 %v1914_v54, 0.0  ;;  %v1656_v55 = vpop.f32.mrf.mxu0  ;;  %v2597_v18 = vld [vmem:[%s3826_s4 + $0x20] sm:$0xff] }
 0x201   :  { %v821_v47 = vpop.permute.xlu1 %820  ;;  %1858 = vmatmul.bf16.gmra.mxu2 %v1224_v7  ;;  %2258 = vmatpush.bf16.msrb.mxu0 %v2597_v18  ;;  %v3774_v18 = vld [vmem:[%s3825_s3 + $0x8] sm:$0xff] }
 0x202   :  { %vm855_vm13 = vcmp.eq.s32.totalorder %v821_v47, %v2976_v46  ;;  %v2003_v58 = vmul.f32 %v3545_v3, %v1969_v49 }
 0x203   :  { %v2399_v45 = vsel %vm855_vm13, 1.0, %v2717_v50 }
 0x204   :  { %v951_v29 = vpack.c.bf16 %v2399_v45, %v2399_v45 }
 0x205   :  { %v1915_v44 = vpop.f32.mrf.mxu3 }
 0x206   :  { %v1303_v34 = vunpack.c.l.b16 %v951_v29  ;;  %v1916_v63 = vadd.f32 %v1915_v44, %v1827_v1  ;;  %v1829_v6 = vpop.f32.mrf.mxu2  ;;  %v1657_v44 = vadd.f32 %v3720_v13, %v1656_v55 }
 0x208   :  { %v1970_v57 = vmax.f32 %v1916_v63, 0.0  ;;  %v1320_v53 = vpack.c.b16 %v1304_v32, %v1303_v34  ;;  %v2028_v32 = vmax.f32 %v3581_v11, %v2027_v35  ;;  %v1658_v49 = vpop.f32.mrf.mxu0  ;;  %v1959_v35 = vmax.f32 %v3614_v48, 0.0 }
 0x20a   :  { %v2004_v12 = vmul.f32 %v3550_v42, %v1970_v57  ;;  %v373_v37 = vpop.permute.xlu1 %372  ;;  %1947 = vmatmul.bf16.gmra.mxu3 %v1320_v53  ;;  %v2029_v62 = vrot.slane %v2028_v32, 2 }
 0x20b   :  { %vm407_vm15 = vcmp.eq.s32.totalorder %v373_v37, %v2976_v46  ;;  %v2024_v46 = vrot.slane %v2023_v52, 1 }
 0x20c   :  { %v2075_v8 = vmax.f32 %v2003_v58, %v2004_v12  ;;  %v2335_v28 = vsel %vm407_vm15, 1.0, %v2717_v50  ;;  %v1624_v12 = vadd.f32 %v3720_v13, %v3603_v21  ;;  %v2030_v11 = vmax.f32 %v2028_v32, %v2029_v62 }
 0x20d   :  { %v503_v4 = vpack.c.bf16 %v2335_v28, %v2335_v28  ;;  %v2025_v41 = vmax.f32 %v2023_v52, %v2024_v46 }
 0x20e   :  { %v2076_v30 = vrot.slane %v2075_v8, 4  ;;  %v1831_v54 = vpop.f32.mrf.mxu2 }
 0x20f   :  { %v1111_v36 = vunpack.c.l.b16 %v503_v4  ;;  %v1918_v0 = vpop.f32.mrf.mxu3 }
 0x210   :  { %v2077_v60 = vmax.f32 %v2075_v8, %v2076_v30  ;;  %v1713_v8 = vadd.f32 %v3621_v59, %v1624_v12  ;;  %v2031_v30 = vrot.slane %v2030_v11, 1 }
 0x211   :  { %v1128_v51 = vpack.c.b16 %v1112_v24, %v1111_v36  ;;  %v1661_v36 = vpop.f32.mrf.mxu0 }
 0x212   :  { %v2078_v17 = vrot.slane %v2077_v60, 2  ;;  %v1740_v14 = vpop.f32.mrf.mxu1  ;;  %v1802_v43 = vadd.f32 %v3619_v26, %v1713_v8 }
 0x213   :  { %v1741_v61 = vadd.f32 %v1740_v14, %v1652_v19  ;;  %1769 = vmatmul.bf16.gmra.mxu1 %v1128_v51 }
 0x214   :  { %v2079_v20 = vmax.f32 %v2077_v60, %v2078_v17  ;;  %v2034_v60 = vrot.slane %v3607_v27, 4  ;;  %v1891_v14 = vadd.f32 %v3632_v15, %v1802_v43 }
 0x215   :  { %v1830_v40 = vadd.f32 %v1829_v6, %v1741_v61 }
 0x216   :  { %v2080_v50 = vrot.slane %v2079_v20, 1  ;;  %v1834_v63 = vpop.f32.mrf.mxu2  ;;  %v2035_v26 = vmax.f32 %v3607_v27, %v2034_v60 }
 0x217   :  { %v1919_v23 = vadd.f32 %v1918_v0, %v1830_v40  ;;  %v1920_v47 = vpop.f32.mrf.mxu3  ;;  %v2032_v0 = vmax.f32 %v2030_v11, %v2031_v30 }
 0x218   :  { %v2081_v56 = vmax.f32 %v2079_v20, %v2080_v50 }
 0x219   :  { %v1971_v33 = vmax.f32 %v1919_v23, 0.0  ;;  %v1663_v32 = vpop.f32.mrf.mxu0 }
 0x21a   :  { %v2131_v7 = vsub.f32 %v2025_v41, %v2081_v56  ;;  %v1742_v9 = vpop.f32.mrf.mxu1  ;;  %v1960_v41 = vmax.f32 %v1891_v14, 0.0  ;;  %v1662_v56 = vadd.f32 %v3720_v13, %v1661_v36  ;;  %v1664_v48 = vadd.f32 %v3720_v13, %v1663_v32 }
 0x21b   :  { %v1743_v1 = vadd.f32 %v1742_v9, %v1654_v2  ;;  %v2005_v34 = vmul.f32 %v3545_v3, %v1971_v33  ;;  %v1659_v3 = vadd.f32 %v3720_v13, %v1658_v49 }
 0x21c   :  { %v2139_v61 = vand.u32 2147483647, %v2131_v7  ;;  %v2036_v7 = vrot.slane %v2035_v26, 2 }
 0x21d   :  { %v1832_v45 = vadd.f32 %v1831_v54, %v1743_v1  ;;  %v3768_v54 = vld [vmem:[%s3825_s3] sm:$0xff] }
 0x21e   :  { %v1836_v59 = vpop.f32.mrf.mxu2  ;;  %v2147_v2 = vpack.c.bf16 %v2139_v61, %v2139_v61  ;;  %v1993_v62 = vmul.f32 %v3768_v54, %v1959_v35 }
 0x21f   :  { %v1921_v29 = vadd.f32 %v1920_v47, %v1832_v45 }
 0x221   :  { %v1972_v31 = vmax.f32 %v1921_v29, 0.0  ;;  %v1923_v57 = vpop.f32.mrf.mxu3  ;;  %v1994_v29 = vmul.f32 %v3774_v18, %v1960_v41 }
 0x223   :  { %v2006_v10 = vmul.f32 %v3550_v42, %v1972_v31  ;;  %v2596_v42 = vld [vmem:[%s3826_s4 + $0x18] sm:$0xff] }
 0x224   :  { %v1745_v53 = vpop.f32.mrf.mxu1  ;;  %2259 = vmatpush.bf16.msrb.mxu0 %v2596_v42  ;;  %v1666_v42 = vpop.f32.mrf.mxu0 }
 0x225   :  { %v2082_v38 = vmax.f32 %v2005_v34, %v2006_v10  ;;  %v1746_v58 = vadd.f32 %v1745_v53, %v1657_v44  ;;  %v2183_v44 = vunpack.c.l.b16 %v2147_v2  ;;  %v2037_v10 = vmax.f32 %v2035_v26, %v2036_v7 }
 0x227   :  { %v2083_v37 = vrot.slane %v2082_v38, 4  ;;  %v1835_v5 = vadd.f32 %v1834_v63, %v1746_v58  ;;  %v2040_v58 = vmax.f32 %v1993_v62, %v1994_v29 }
 0x229   :  { %v2084_v28 = vmax.f32 %v2082_v38, %v2083_v37  ;;  %v1924_v4 = vadd.f32 %v1923_v57, %v1835_v5  ;;  %v1925_v19 = vpop.f32.mrf.mxu3  ;;  %v2038_v5 = vrot.slane %v2037_v10, 1 }
 0x22b   :  { %v2085_v24 = vrot.slane %v2084_v28, 2  ;;  %v1973_v20 = vmax.f32 %v1924_v4, 0.0  ;;  %v2041_v4 = vrot.slane %v2040_v58, 4  ;;  %v2039_v43 = vmax.f32 %v2037_v10, %v2038_v5 }
 0x22c   :  { %v1747_v6 = vpop.f32.mrf.mxu1 }
 0x22d   :  { %v2086_v21 = vmax.f32 %v2084_v28, %v2085_v24  ;;  %v1748_v52 = vadd.f32 %v1747_v6, %v1659_v3  ;;  %v2007_v15 = vmul.f32 %v3768_v54, %v1973_v20 }
 0x22f   :  { %v2087_v51 = vrot.slane %v2086_v21, 1  ;;  %v1837_v17 = vadd.f32 %v1836_v59, %v1748_v52  ;;  %v2042_v52 = vmax.f32 %v2040_v58, %v2041_v4 }
 0x231   :  { %v2088_v46 = vmax.f32 %v2086_v21, %v2087_v51  ;;  %v1926_v40 = vadd.f32 %v1925_v19, %v1837_v17  ;;  %v1928_v31 = vpop.f32.mrf.mxu3  ;;  %v2043_v14 = vrot.slane %v2042_v52, 2 }
 0x233   :  { %v2132_v50 = vsub.f32 %v2032_v0, %v2088_v46  ;;  %v1974_v23 = vmax.f32 %v1926_v40, 0.0  ;;  %v1839_v9 = vpop.f32.mrf.mxu2  ;;  %v1667_v40 = vadd.f32 %v3720_v13, %v1666_v42  ;;  %v2044_v41 = vmax.f32 %v2042_v52, %v2043_v14 }
 0x235   :  { %v2140_v55 = vand.u32 2147483647, %v2132_v50  ;;  %v2008_v27 = vmul.f32 %v3774_v18, %v1974_v23  ;;  %v1668_v23 = vpop.f32.mrf.mxu0 }
 0x236   :  { %v1750_v1 = vpop.f32.mrf.mxu1  ;;  %v1669_v7 = vadd.f32 %v3720_v13, %v1668_v23 }
 0x237   :  { %v2148_v47 = vpack.c.bf16 %v2140_v55, %v2140_v55  ;;  %v2089_v45 = vmax.f32 %v2007_v15, %v2008_v27  ;;  %v1751_v33 = vadd.f32 %v1750_v1, %v1662_v56  ;;  %v2045_v1 = vrot.slane %v2044_v41, 1 }
 0x239   :  { %v2184_v49 = vunpack.c.l.b16 %v2148_v47  ;;  %v2090_v34 = vrot.slane %v2089_v45, 4  ;;  %v1840_v63 = vadd.f32 %v1839_v9, %v1751_v33  ;;  %v1930_v30 = vpop.f32.mrf.mxu3  ;;  %v2595_v33 = vld [vmem:[%s3826_s4 + $0x10] sm:$0xff] }
 0x23a   :  { %2260 = vmatpush.bf16.msrb.mxu0 %v2595_v33 }
 0x23b   :  { %v2091_v57 = vmax.f32 %v2089_v45, %v2090_v34  ;;  %v1929_v53 = vadd.f32 %v1928_v31, %v1840_v63  ;;  %v2192_v38 = vsel %vm2191_vm0, %v2184_v49, %v2183_v44  ;;  %v1841_v28 = vpop.f32.mrf.mxu2  ;;  %v2046_v44 = vmax.f32 %v2044_v41, %v2045_v1 }
 0x23c   :  { %v2048_v49 = vrot.slane %v3655_v22, 4 }
 0x23d   :  { %v2092_v12 = vrot.slane %v2091_v57, 2  ;;  %v1975_v36 = vmax.f32 %v1929_v53, 0.0 }
 0x23e   :  { %v1752_v37 = vpop.f32.mrf.mxu1 }
 0x23f   :  { %v2093_v11 = vmax.f32 %v2091_v57, %v2092_v12  ;;  %v1753_v8 = vadd.f32 %v1752_v37, %v1664_v48  ;;  %v2009_v17 = vmul.f32 %v3768_v54, %v1975_v36  ;;  %v1671_v12 = vpop.f32.mrf.mxu0 }
 0x241   :  { %v2094_v3 = vrot.slane %v2093_v11, 1  ;;  %v1842_v24 = vadd.f32 %v1841_v28, %v1753_v8 }
 0x243   :  { %v2095_v6 = vmax.f32 %v2093_v11, %v2094_v3  ;;  %v1931_v21 = vadd.f32 %v1930_v30, %v1842_v24 }
 0x245   :  { %v2133_v60 = vsub.f32 %v2039_v43, %v2095_v6  ;;  %v1976_v59 = vmax.f32 %v1931_v21, 0.0  ;;  %v1844_v20 = vpop.f32.mrf.mxu2  ;;  %v1672_v6 = vadd.f32 %v3720_v13, %v1671_v12 }
 0x246   :  { %v1755_v19 = vpop.f32.mrf.mxu1 }
 0x247   :  { %v2141_v51 = vand.u32 2147483647, %v2133_v60  ;;  %v2010_v0 = vmul.f32 %v3774_v18, %v1976_v59  ;;  %v1756_v2 = vadd.f32 %v1755_v19, %v1667_v40  ;;  %v1673_v60 = vpop.f32.mrf.mxu0 }
 0x249   :  { %v2149_v61 = vpack.c.bf16 %v2141_v51, %v2141_v51  ;;  %v2096_v46 = vmax.f32 %v2009_v17, %v2010_v0  ;;  %v1845_v45 = vadd.f32 %v1844_v20, %v1756_v2  ;;  %v2594_v51 = vld [vmem:[%s3826_s4 + $0x8] sm:$0xff] }
 0x24a   :  { %2261 = vmatpush.bf16.msrb.mxu0 %v2594_v51 }
 0x24b   :  { %v2185_v26 = vunpack.c.l.b16 %v2149_v61  ;;  %v2097_v50 = vrot.slane %v2096_v46, 4 }
 0x24d   :  { %v2098_v56 = vmax.f32 %v2096_v46, %v2097_v50  ;;  %v2194_v55 = vsel %vm2193_vm1, %v2185_v26, %v2192_v38  ;;  %v1846_v31 = vpop.f32.mrf.mxu2  ;;  %v2049_v38 = vmax.f32 %v3655_v22, %v2048_v49  ;;  %v1674_v46 = vadd.f32 %v3720_v13, %v1673_v60 }
 0x24e   :  { %v1757_v15 = vpop.f32.mrf.mxu1  ;;  %v1933_v27 = vpop.f32.mrf.mxu3 }
 0x24f   :  { %v2099_v9 = vrot.slane %v2098_v56, 2  ;;  %v1758_v47 = vadd.f32 %v1757_v15, %v1669_v7  ;;  %v1934_v32 = vadd.f32 %v1933_v27, %v1845_v45  ;;  %v2050_v8 = vrot.slane %v2049_v38, 2 }
 0x251   :  { %v2100_v35 = vmax.f32 %v2098_v56, %v2099_v9  ;;  %v1847_v63 = vadd.f32 %v1846_v31, %v1758_v47  ;;  %v1977_v57 = vmax.f32 %v1934_v32, 0.0  ;;  %v2051_v42 = vmax.f32 %v2049_v38, %v2050_v8 }
 0x252   :  { %v2055_v56 = vrot.slane %v3680_v25, 4 }
 0x253   :  { %v2101_v29 = vrot.slane %v2100_v35, 1  ;;  %v2011_v5 = vmul.f32 %v3768_v54, %v1977_v57  ;;  %v2052_v52 = vrot.slane %v2051_v42, 1 }
 0x255   :  { %v2102_v34 = vmax.f32 %v2100_v35, %v2101_v29  ;;  %v2053_v14 = vmax.f32 %v2051_v42, %v2052_v52  ;;  %v2056_v35 = vmax.f32 %v3680_v25, %v2055_v56 }
 0x256   :  { %v1935_v10 = vpop.f32.mrf.mxu3 }
 0x257   :  { %v2134_v62 = vsub.f32 %v2046_v44, %v2102_v34  ;;  %v1936_v53 = vadd.f32 %v1935_v10, %v1847_v63  ;;  %v1849_v43 = vpop.f32.mrf.mxu2  ;;  %v2057_v49 = vrot.slane %v2056_v35, 2 }
 0x259   :  { %v2142_v58 = vand.u32 2147483647, %v2134_v62  ;;  %v1978_v48 = vmax.f32 %v1936_v53, 0.0  ;;  %v2058_v53 = vmax.f32 %v2056_v35, %v2057_v49 }
 0x25b   :  { %v2150_v37 = vpack.c.bf16 %v2142_v58, %v2142_v58  ;;  %v2012_v11 = vmul.f32 %v3774_v18, %v1978_v48 }
 0x25d   :  { %v2186_v28 = vunpack.c.l.b16 %v2150_v37  ;;  %v2103_v4 = vmax.f32 %v2011_v5, %v2012_v11  ;;  %v2059_v37 = vrot.slane %v2058_v53, 1 }
 0x25f   :  { %v2104_v3 = vrot.slane %v2103_v4, 4  ;;  %v2196_v24 = vsel %vm2195_vm2, %v2186_v28, %v2194_v55  ;;  %v1851_v40 = vpop.f32.mrf.mxu2  ;;  %v1676_v55 = vpop.f32.mrf.mxu0 }
 0x260   :  { %v1938_v19 = vpop.f32.mrf.mxu3  ;;  %v1677_v33 = vadd.f32 %v3720_v13, %v1676_v55 }
 0x261   :  { %v2105_v30 = vmax.f32 %v2103_v4, %v2104_v3  ;;  %v2062_v4 = vrot.slane %v3706_v39, 4 }
 0x263   :  { %v2106_v22 = vrot.slane %v2105_v30, 2  ;;  %v1760_v36 = vpop.f32.mrf.mxu1 }
 0x264   :  { %v1761_v21 = vadd.f32 %v1760_v36, %v1672_v6  ;;  %v2063_v36 = vmax.f32 %v3706_v39, %v2062_v4 }
 0x265   :  { %v2107_v59 = vmax.f32 %v2105_v30, %v2106_v22  ;;  %v2060_v30 = vmax.f32 %v2058_v53, %v2059_v37 }
 0x266   :  { %v1850_v0 = vadd.f32 %v1849_v43, %v1761_v21  ;;  %v2064_v51 = vrot.slane %v2063_v36, 2 }
 0x267   :  { %v2108_v17 = vrot.slane %v2107_v59, 1  ;;  %v1854_v31 = vpop.f32.mrf.mxu2  ;;  %v1678_v57 = vpop.f32.mrf.mxu0 }
 0x268   :  { %v1939_v50 = vadd.f32 %v1938_v19, %v1850_v0  ;;  %v1940_v27 = vpop.f32.mrf.mxu3  ;;  %v1679_v25 = vadd.f32 %v3720_v13, %v1678_v57 }
 0x269   :  { %v2109_v61 = vmax.f32 %v2107_v59, %v2108_v17 }
 0x26a   :  { %v1979_v7 = vmax.f32 %v1939_v50, 0.0 }
 0x26b   :  { %v2135_v20 = vsub.f32 %v2053_v14, %v2109_v61  ;;  %v1762_v26 = vpop.f32.mrf.mxu1 }
 0x26c   :  { %v1763_v23 = vadd.f32 %v1762_v26, %v1674_v46  ;;  %v2013_v29 = vmul.f32 %v3768_v54, %v1979_v7 }
 0x26d   :  { %v2143_v41 = vand.u32 2147483647, %v2135_v20  ;;  %v2065_v20 = vmax.f32 %v2063_v36, %v2064_v51 }
 0x26e   :  { %v1852_v2 = vadd.f32 %v1851_v40, %v1763_v23  ;;  %v2593_v23 = vld [vmem:[%s3826_s4] sm:$0xff] }
 0x26f   :  { %v2151_v15 = vpack.c.bf16 %v2143_v41, %v2143_v41  ;;  %v1856_v28 = vpop.f32.mrf.mxu2  ;;  %v1681_v14 = vpop.f32.mrf.mxu0  ;;  %v2066_v41 = vrot.slane %v2065_v20, 1  ;;  %2262 = vmatpush.bf16.msrb.mxu0 %v2593_v23 }
 0x270   :  { %v1941_v9 = vadd.f32 %v1940_v27, %v1852_v2  ;;  %v1682_v39 = vadd.f32 %v3720_v13, %v1681_v14 }
 0x271   :  { %v2187_v1 = vunpack.c.l.b16 %v2151_v15 }
 0x272   :  { %v1980_v47 = vmax.f32 %v1941_v9, 0.0  ;;  %v1943_v10 = vpop.f32.mrf.mxu3  ;;  %v2067_v9 = vmax.f32 %v2065_v20, %v2066_v41 }
 0x273   :  { %v2198_v45 = vsel %vm2197_vm3, %v2187_v1, %v2196_v24 }
 0x274   :  { %v2014_v32 = vmul.f32 %v3774_v18, %v1980_v47 }
 0x275   :  { %v1765_v44 = vpop.f32.mrf.mxu1 }
 0x276   :  { %v2110_v34 = vmax.f32 %v2013_v29, %v2014_v32  ;;  %v1766_v63 = vadd.f32 %v1765_v44, %v1677_v33 }
 0x277   :  { %v1683_v35 = vpop.f32.mrf.mxu0 }
 0x278   :  { %v2111_v62 = vrot.slane %v2110_v34, 4  ;;  %v1855_v58 = vadd.f32 %v1854_v31, %v1766_v63  ;;  %v1684_v33 = vadd.f32 %v3720_v13, %v1683_v35  ;;  %v2069_v63 = vrot.slane %v3726_v16, 4 }
 0x27a   :  { %v2112_v38 = vmax.f32 %v2110_v34, %v2111_v62  ;;  %v1944_v11 = vadd.f32 %v1943_v10, %v1855_v58  ;;  %v1945_v42 = vpop.f32.mrf.mxu3 }
 0x27c   :  { %v2113_v48 = vrot.slane %v2112_v38, 2  ;;  %v1981_v6 = vmax.f32 %v1944_v11, 0.0 }
 0x27d   :  { %v1767_v12 = vpop.f32.mrf.mxu1 }
 0x27e   :  { %v2114_v5 = vmax.f32 %v2112_v38, %v2113_v48  ;;  %v1768_v8 = vadd.f32 %v1767_v12, %v1679_v25  ;;  %v2015_v59 = vmul.f32 %v3768_v54, %v1981_v6  ;;  %v2070_v25 = vmax.f32 %v3726_v16, %v2069_v63 }
 0x280   :  { %v2115_v3 = vrot.slane %v2114_v5, 1  ;;  %v1857_v24 = vadd.f32 %v1856_v28, %v1768_v8  ;;  %v2071_v37 = vrot.slane %v2070_v25, 2 }
 0x282   :  { %v2116_v43 = vmax.f32 %v2114_v5, %v2115_v3  ;;  %v1946_v22 = vadd.f32 %v1945_v42, %v1857_v24  ;;  %v2072_v8 = vmax.f32 %v2070_v25, %v2071_v37 }
 0x284   :  { %v2136_v21 = vsub.f32 %v2060_v30, %v2116_v43  ;;  %v1982_v52 = vmax.f32 %v1946_v22, 0.0  ;;  %v1859_v2 = vpop.f32.mrf.mxu2  ;;  %v2073_v3 = vrot.slane %v2072_v8, 1 }
 0x286   :  { %v2144_v60 = vand.u32 2147483647, %v2136_v21  ;;  %v2016_v19 = vmul.f32 %v3774_v18, %v1982_v52  ;;  %v2074_v30 = vmax.f32 %v2072_v8, %v2073_v3 }
 0x288   :  { %v2117_v17 = vmax.f32 %v2015_v59, %v2016_v19  ;;  %v2152_v0 = vpack.c.bf16 %v2144_v60, %v2144_v60 }
 0x28a   :  { %v2118_v61 = vrot.slane %v2117_v17, 4  ;;  %v2188_v46 = vunpack.c.l.b16 %v2152_v0 }
 0x28c   :  { %v2119_v40 = vmax.f32 %v2117_v17, %v2118_v61  ;;  %v2200_v26 = vsel %vm2199_vm4, %v2188_v46, %v2198_v45  ;;  %v1861_v49 = vpop.f32.mrf.mxu2 }
 0x28d   :  { %v1948_v7 = vpop.f32.mrf.mxu3 }
 0x28e   :  { %v2120_v50 = vrot.slane %v2119_v40, 2 }
 0x290   :  { %v2121_v56 = vmax.f32 %v2119_v40, %v2120_v50  ;;  %v1770_v55 = vpop.f32.mrf.mxu1 }
 0x291   :  { %v1771_v15 = vadd.f32 %v1770_v55, %v1682_v39 }
 0x292   :  { %v2122_v27 = vrot.slane %v2121_v56, 1 }
 0x293   :  { %v1860_v47 = vadd.f32 %v1859_v2, %v1771_v15 }
 0x294   :  { %v2123_v1 = vmax.f32 %v2121_v56, %v2122_v27 }
 0x295   :  { %v1949_v31 = vadd.f32 %v1948_v7, %v1860_v47  ;;  %v1950_v62 = vpop.f32.mrf.mxu3 }
 0x296   :  { %v2137_v45 = vsub.f32 %v2067_v9, %v2123_v1 }
 0x297   :  { %v1983_v53 = vmax.f32 %v1949_v31, 0.0 }
 0x298   :  { %v1772_v29 = vpop.f32.mrf.mxu1  ;;  %v2145_v32 = vand.u32 2147483647, %v2137_v45 }
 0x299   :  { %v1773_v44 = vadd.f32 %v1772_v29, %v1684_v33  ;;  %v2017_v13 = vmul.f32 %v3768_v54, %v1983_v53 }
 0x29a   :  { %v2153_v34 = vpack.c.bf16 %v2145_v32, %v2145_v32 }
 0x29b   :  { %v1862_v10 = vadd.f32 %v1861_v49, %v1773_v44 }
 0x29c   :  { %v2189_v57 = vunpack.c.l.b16 %v2153_v34 }
 0x29d   :  { %v1951_v38 = vadd.f32 %v1950_v62, %v1862_v10 }
 0x29e   :  { %v2202_v58 = vsel %vm2201_vm5, %v2189_v57, %v2200_v26 }
 0x29f   :  { %v1984_v48 = vmax.f32 %v1951_v38, 0.0 }
 0x2a1   :  { %v2018_v12 = vmul.f32 %v3774_v18, %v1984_v48  ;;  %v2697_v18 = vld [vmem:[%s3827_s5] ss:$0 sm:$0xff] }
 0x2a3   :  { %v2124_v5 = vmax.f32 %v2017_v13, %v2018_v12 }
 0x2a5   :  { %v2125_v11 = vrot.slane %v2124_v5, 4 }
 0x2a7   :  { %v2126_v28 = vmax.f32 %v2124_v5, %v2125_v11 }
 0x2a9   :  { %v2127_v4 = vrot.slane %v2126_v28, 2 }
 0x2ab   :  { %v2128_v24 = vmax.f32 %v2126_v28, %v2127_v4 }
 0x2ad   :  { %v2129_v42 = vrot.slane %v2128_v24, 1 }
 0x2af   :  { %v2130_v43 = vmax.f32 %v2128_v24, %v2129_v42 }
 0x2b1   :  { %v2138_v6 = vsub.f32 %v2074_v30, %v2130_v43 }
 0x2b3   :  { %v2146_v22 = vand.u32 2147483647, %v2138_v6 }
 0x2b5   :  { %v2154_v36 = vpack.c.bf16 %v2146_v22, %v2146_v22 }
 0x2b7   :  { %v2190_v16 = vunpack.c.l.b16 %v2154_v36 }
 0x2b9   :  { %v2204_v21 = vsel %vm2203_vm6, %v2190_v16, %v2202_v58 }
 0x2ba   :  { %v2205_v54 = vpack.c.b16 %v2204_v21, %v2204_v21 }
 0x2bc   :  { %2263 = vmatmul.bf16.vlgmr.msrb.gmra.mxu0 %v2205_v54 }
 0x339   :  { %v2264_v52 = vpop.f32.mrf.mxu0 }
 0x33a   :  { %v2265_v60 = vadd.f32 %v2697_v18, %v2264_v52 }
 0x33c   :  { %2268 = vst [vmem:[%s3828_s6] sm:$0xff] %v2265_v60 }
 0x341   :  { %v2266_v59 = vpop.f32.mrf.mxu0 }

</bundles_post_ra>
